<compile_context>
chip_gen: v6e
topology: v6e:2x2x1
jax: 0.10.0
libtpu: 0.0.40
codegen_flags: <defaults>
</compile_context>

<pallas_src>
import functools
import math

import jax
import jax.numpy as jnp
from jax import lax
from jax.experimental import pallas as pl
from jax.experimental.pallas import tpu as pltpu

LN_EPS = 1e-5
NEG_INF = -1e9  # key-padding mask value (safe: no inf-inf, exp underflows to 0)


def _round_up(x, m):
    return ((x + m - 1) // m) * m


def _gelu_tanh(x):
    # TODO(synk): torch nn.GELU default is erf-exact; tanh approximation used here
    # (max abs deviation ~1e-3) since erf has no guaranteed Mosaic lowering.
    c = math.sqrt(2.0 / math.pi)
    return 0.5 * x * (1.0 + jnp.tanh(c * (x + 0.044715 * x * x * x)))


# --------------------------------------------------------------------------- #
# Fused Block kernel: one grid point per batch element.
# --------------------------------------------------------------------------- #
def _block_kernel(x_ref, ln1w_ref, ln1b_ref, wqkv_ref, bqkv_ref, bias_ref,
                  wproj_ref, bproj_ref, g1_ref, ln2w_ref, ln2b_ref,
                  wfc1_ref, bfc1_ref, wfc2_ref, bfc2_ref, g2_ref, o_ref,
                  *, num_heads, head_dim, scale, eps):
    f32, bf16 = jnp.float32, jnp.bfloat16
    D = num_heads * head_dim

    x = x_ref[...].astype(f32)                                   # (Np, C)

    # ---- LayerNorm1 + QKV projection (bf16 MXU, f32 accumulate) -----------
    mu = jnp.mean(x, axis=-1, keepdims=True)
    xc = x - mu
    var = jnp.mean(xc * xc, axis=-1, keepdims=True)
    h = xc * lax.rsqrt(var + eps) * ln1w_ref[...] + ln1b_ref[...]
    qkv = jnp.dot(h.astype(bf16), wqkv_ref[...],
                  preferred_element_type=f32) + bqkv_ref[...]    # (Np, 3D)

    q = qkv[:, :D] * scale
    k = qkv[:, D:2 * D]
    v = qkv[:, 2 * D:]

    # ---- per-head attention with fused relative-position bias -------------
    # Heads are statically unrolled (num_heads is small & static); each head's
    # context lands in its (N, hd) column slab of the lane-dense (N, D) ctx.
    ctx_parts = []
    for hh in range(num_heads):
        sl = slice(hh * head_dim, (hh + 1) * head_dim)
        qh = q[:, sl].astype(bf16)                               # (Np, hd)
        kh = k[:, sl].astype(bf16)
        vh = v[:, sl].astype(bf16)
        s = lax.dot_general(qh, kh, (((1,), (1,)), ((), ())),
                            preferred_element_type=f32)          # (Np, Np)
        s = s + bias_ref[hh]                                     # fused bias + key mask
        m = jnp.max(s, axis=-1, keepdims=True)
        p = jnp.exp(s - m)
        denom = jnp.sum(p, axis=-1, keepdims=True)
        p = p * pl.reciprocal(denom, approx=True)                # EUP, not VALU divide
        ctx_parts.append(jnp.dot(p.astype(bf16), vh,
                                 preferred_element_type=f32))    # (Np, hd)
    ctx = jnp.concatenate(ctx_parts, axis=-1)                    # (Np, D) lane-dense

    # ---- output projection + gamma_1 + residual ----------------------------
    y1 = jnp.dot(ctx.astype(bf16), wproj_ref[...],
                 preferred_element_type=f32) + bproj_ref[...]
    x1 = x + g1_ref[...] * y1

    # ---- LayerNorm2 + MLP (fc1 -> GELU -> fc2) + gamma_2 + residual --------
    mu2 = jnp.mean(x1, axis=-1, keepdims=True)
    x1c = x1 - mu2
    var2 = jnp.mean(x1c * x1c, axis=-1, keepdims=True)
    h2 = x1c * lax.rsqrt(var2 + eps) * ln2w_ref[...] + ln2b_ref[...]
    a = jnp.dot(h2.astype(bf16), wfc1_ref[...],
                preferred_element_type=f32) + bfc1_ref[...]
    a = _gelu_tanh(a)
    y2 = jnp.dot(a.astype(bf16), wfc2_ref[...],
                 preferred_element_type=f32) + bfc2_ref[...]
    o_ref[...] = (x1 + g2_ref[...] * y2).astype(o_ref.dtype)


# --------------------------------------------------------------------------- #
# Parameter-only helpers (step-constant; computed once in the wrapper)
# --------------------------------------------------------------------------- #
def build_relative_position_index(window_size):
    wh, ww = window_size
    num_rel = (2 * wh - 1) * (2 * ww - 1) + 3
    ch, cw = jnp.meshgrid(jnp.arange(wh), jnp.arange(ww), indexing="ij")
    coords = jnp.stack([ch, cw]).reshape(2, -1)                  # [2, Wh*Ww]
    rel = coords[:, :, None] - coords[:, None, :]
    rel = jnp.transpose(rel, (1, 2, 0))                          # [N, N, 2]
    rc0 = (rel[:, :, 0] + (wh - 1)) * (2 * ww - 1)
    rc1 = rel[:, :, 1] + (ww - 1)
    rel_sum = rc0 + rc1
    n = wh * ww
    idx = jnp.zeros((n + 1, n + 1), dtype=jnp.int32)
    idx = idx.at[1:, 1:].set(rel_sum.astype(jnp.int32))
    idx = idx.at[0, :].set(num_rel - 3)
    idx = idx.at[:, 0].set(num_rel - 2)
    idx = idx.at[0, 0].set(num_rel - 1)
    return idx, num_rel


def relative_position_bias(table, rel_index, num_heads):
    """Step-constant gather (params only) -> [H, L, L]; the add is fused in-kernel."""
    L = rel_index.shape[0]
    bias = jnp.take(table, rel_index.reshape(-1), axis=0)        # [L*L, H]
    return jnp.transpose(bias.reshape(L, L, num_heads), (2, 0, 1))


# --------------------------------------------------------------------------- #
# Block forward (single fused pallas_call, grid over batch)
# --------------------------------------------------------------------------- #
def block_forward(x, params, *, num_heads, rel_pos_bias=None, eps=LN_EPS):
    B, N, C = x.shape
    w_qkv = params["w_qkv"]                                      # [C, 3*D]
    D = w_qkv.shape[1] // 3
    hd = D // num_heads
    scale = hd ** (-0.5)
    Hm = params["w_fc1"].shape[1]

    Np = _round_up(N, 8)                                         # sublane-aligned tokens
    x_p = jnp.pad(x.astype(jnp.float32), ((0, 0), (0, Np - N), (0, 0)))

    # step-constant bias (params only): gather + shared rel_pos_bias + key-pad mask
    bias = relative_position_bias(params["rel_table"], params["rel_index"], num_heads)
    if rel_pos_bias is not None:
        bias = bias + rel_pos_bias
    bias = jnp.pad(bias.astype(jnp.float32),
                   ((0, 0), (0, Np - N), (0, Np - N)),
                   constant_values=NEG_INF)                      # mask padded keys

    bf16 = jnp.bfloat16
    row = lambda p: p.reshape(1, -1).astype(jnp.float32)
    const2 = lambda shape: pl.BlockSpec(shape, lambda b: (0, 0))

    kern = functools.partial(_block_kernel, num_heads=num_heads, head_dim=hd,
                             scale=scale, eps=eps)

    out = pl.pallas_call(
        kern,
        out_shape=jax.ShapeDtypeStruct((B, Np, C), jnp.float32),
        grid=(B,),
        in_specs=[
            pl.BlockSpec((None, Np, C), lambda b: (b, 0, 0)),            # x
            const2((1, C)), const2((1, C)),                              # ln1 w, b
            const2((C, 3 * D)), const2((1, 3 * D)),                      # qkv W (bf16), b
            pl.BlockSpec((num_heads, Np, Np), lambda b: (0, 0, 0)),      # bias (resident)
            const2((D, C)), const2((1, C)),                              # proj W (bf16), b
            const2((1, C)),                                              # gamma1
            const2((1, C)), const2((1, C)),                              # ln2 w, b
            const2((C, Hm)), const2((1, Hm)),                            # fc1 W (bf16), b
            const2((Hm, C)), const2((1, C)),                             # fc2 W (bf16), b
            const2((1, C)),                                              # gamma2
        ],
        out_specs=pl.BlockSpec((None, Np, C), lambda b: (b, 0, 0)),
        compiler_params=pltpu.CompilerParams(
            dimension_semantics=("parallel",)),                  # >=2 steps -> both v7x TCs
    )(x_p,
      row(params["ln1_w"]), row(params["ln1_b"]),
      w_qkv.astype(bf16), row(params["b_qkv"]),
      bias,
      params["w_proj"].astype(bf16), row(params["b_proj"]),
      row(params["gamma1"]),
      row(params["ln2_w"]), row(params["ln2_b"]),
      params["w_fc1"].astype(bf16), row(params["b_fc1"]),
      params["w_fc2"].astype(bf16), row(params["b_fc2"]),
      row(params["gamma2"]))

    return out[:, :N, :]


# --------------------------------------------------------------------------- #
# Pure-JAX reference of torch Block.forward (eval mode, p=0 dropouts, f32)
# --------------------------------------------------------------------------- #
def block_reference(x, params, *, num_heads, rel_pos_bias=None, eps=LN_EPS):
    B, N, C = x.shape
    D = params["w_qkv"].shape[1] // 3
    hd = D // num_heads
    scale = hd ** (-0.5)

    def ln(v, w, b):
        mu = v.mean(-1, keepdims=True)
        xc = v - mu
        var = (xc * xc).mean(-1, keepdims=True)
        return xc * lax.rsqrt(var + eps) * w + b

    h = ln(x, params["ln1_w"], params["ln1_b"])
    qkv = h @ params["w_qkv"] + params["b_qkv"]
    qkv = qkv.reshape(B, N, 3, num_heads, hd).transpose(2, 0, 3, 1, 4)
    q, k, v = qkv[0] * scale, qkv[1], qkv[2]
    attn = jnp.einsum("bhqd,bhkd->bhqk", q, k)
    bias = relative_position_bias(params["rel_table"], params["rel_index"], num_heads)
    if rel_pos_bias is not None:
        bias = bias + rel_pos_bias
    attn = attn + bias[None]
    attn = jax.nn.softmax(attn, axis=-1)
    ctx = jnp.einsum("bhqk,bhkd->bhqd", attn, v)
    ctx = ctx.transpose(0, 2, 1, 3).reshape(B, N, D)
    x = x + params["gamma1"] * (ctx @ params["w_proj"] + params["b_proj"])
    h2 = ln(x, params["ln2_w"], params["ln2_b"])
    a = _gelu_tanh(h2 @ params["w_fc1"] + params["b_fc1"])
    x = x + params["gamma2"] * (a @ params["w_fc2"] + params["b_fc2"])
    return x


if __name__ == "__main__":
    window_size = (4, 4)
    num_heads = 8
    dim = 64
    mlp_ratio = 4.0
    init_values = 0.1
    qkv_bias = True
    B = 2

    wh, ww = window_size
    N = wh * ww + 1                      # 17 tokens (window + cls)
    head_dim = dim // num_heads
    all_head_dim = head_dim * num_heads
    mlp_hidden = int(dim * mlp_ratio)

    rel_index, num_rel = build_relative_position_index(window_size)

    key = jax.random.PRNGKey(0)
    ks = jax.random.split(key, 16)
    s = 0.1
    q_bias = jax.random.normal(ks[9], (all_head_dim,), jnp.float32) * s
    v_bias = jax.random.normal(ks[10], (all_head_dim,), jnp.float32) * s
    b_qkv = (jnp.concatenate([q_bias, jnp.zeros((all_head_dim,), jnp.float32), v_bias])
             if qkv_bias else jnp.zeros((3 * all_head_dim,), jnp.float32))

    params = dict(
        ln1_w=1.0 + 0.1 * jax.random.normal(ks[12], (dim,), jnp.float32),
        ln1_b=0.1 * jax.random.normal(ks[13], (dim,), jnp.float32),
        w_qkv=jax.random.normal(ks[0], (dim, 3 * all_head_dim), jnp.float32) * s,
        b_qkv=b_qkv,
        rel_table=jax.random.normal(ks[1], (num_rel, num_heads), jnp.float32) * s,
        rel_index=rel_index,
        w_proj=jax.random.normal(ks[2], (all_head_dim, dim), jnp.float32) * s,
        b_proj=jax.random.normal(ks[3], (dim,), jnp.float32) * s,
        ln2_w=1.0 + 0.1 * jax.random.normal(ks[14], (dim,), jnp.float32),
        ln2_b=0.1 * jax.random.normal(ks[15], (dim,), jnp.float32),
        w_fc1=jax.random.normal(ks[4], (dim, mlp_hidden), jnp.float32) * s,
        b_fc1=jax.random.normal(ks[5], (mlp_hidden,), jnp.float32) * s,
        w_fc2=jax.random.normal(ks[6], (mlp_hidden, dim), jnp.float32) * s,
        b_fc2=jax.random.normal(ks[7], (dim,), jnp.float32) * s,
        gamma1=init_values * jnp.ones((dim,), jnp.float32),
        gamma2=init_values * jnp.ones((dim,), jnp.float32),
    )

    x = jax.random.normal(ks[8], (B, N, dim), jnp.float32)
    rel_pos_bias = jax.random.normal(ks[11], (num_heads, N, N), jnp.float32) * s

    out = block_forward(x, params, num_heads=num_heads, rel_pos_bias=rel_pos_bias)
    out = jax.block_until_ready(out)

    # f32 "highest" reference (scoped context, no process-global side effect).
    with jax.default_matmul_precision("highest"):
        ref = block_reference(x, params, num_heads=num_heads, rel_pos_bias=rel_pos_bias)
        ref = jax.block_until_ready(ref)

    assert out.shape == (B, N, dim)
    # bf16 MXU operands -> loosened tolerance vs the f32 reference.
    err = float(jnp.max(jnp.abs(out - ref)))
    assert jnp.allclose(out, ref, atol=2e-2, rtol=2e-2), err

    print("KERNEL_OK")
</pallas_src>

<mosaic_0001>
module attributes {stable_mosaic.version = 11 : i64} {
  func.func @_block_kernel(%arg0: i32, %arg1: memref<1x24x64xf32, #tpu.memory_space<vmem>>, %arg2: memref<1x64xf32, #tpu.memory_space<vmem>>, %arg3: memref<1x64xf32, #tpu.memory_space<vmem>>, %arg4: memref<64x192xbf16, #tpu.memory_space<vmem>>, %arg5: memref<1x192xf32, #tpu.memory_space<vmem>>, %arg6: memref<8x24x24xf32, #tpu.memory_space<vmem>>, %arg7: memref<64x64xbf16, #tpu.memory_space<vmem>>, %arg8: memref<1x64xf32, #tpu.memory_space<vmem>>, %arg9: memref<1x64xf32, #tpu.memory_space<vmem>>, %arg10: memref<1x64xf32, #tpu.memory_space<vmem>>, %arg11: memref<1x64xf32, #tpu.memory_space<vmem>>, %arg12: memref<64x256xbf16, #tpu.memory_space<vmem>>, %arg13: memref<1x256xf32, #tpu.memory_space<vmem>>, %arg14: memref<256x64xbf16, #tpu.memory_space<vmem>>, %arg15: memref<1x64xf32, #tpu.memory_space<vmem>>, %arg16: memref<1x64xf32, #tpu.memory_space<vmem>>, %arg17: memref<1x24x64xf32, #tpu.memory_space<vmem>>) attributes {dimension_semantics = [#tpu.dimension_semantics<parallel>], iteration_bounds = array<i64: 2>, scalar_prefetch = 0 : i64, scratch_operands = 0 : i64, tpu.core_type = #tpu.core_type<tc>, window_params = [{transform_indices = @transform_0, window_bounds = array<i64: 1, 24, 64>}, {pipeline_mode = #tpu.pipeline_mode<synchronous>, transform_indices = @transform_1, window_bounds = array<i64: 1, 64>}, {pipeline_mode = #tpu.pipeline_mode<synchronous>, transform_indices = @transform_2, window_bounds = array<i64: 1, 64>}, {pipeline_mode = #tpu.pipeline_mode<synchronous>, transform_indices = @transform_3, window_bounds = array<i64: 64, 192>}, {pipeline_mode = #tpu.pipeline_mode<synchronous>, transform_indices = @transform_4, window_bounds = array<i64: 1, 192>}, {pipeline_mode = #tpu.pipeline_mode<synchronous>, transform_indices = @transform_5, window_bounds = array<i64: 8, 24, 24>}, {pipeline_mode = #tpu.pipeline_mode<synchronous>, transform_indices = @transform_6, window_bounds = array<i64: 64, 64>}, {pipeline_mode = #tpu.pipeline_mode<synchronous>, transform_indices = @transform_7, window_bounds = array<i64: 1, 64>}, {pipeline_mode = #tpu.pipeline_mode<synchronous>, transform_indices = @transform_8, window_bounds = array<i64: 1, 64>}, {pipeline_mode = #tpu.pipeline_mode<synchronous>, transform_indices = @transform_9, window_bounds = array<i64: 1, 64>}, {pipeline_mode = #tpu.pipeline_mode<synchronous>, transform_indices = @transform_10, window_bounds = array<i64: 1, 64>}, {pipeline_mode = #tpu.pipeline_mode<synchronous>, transform_indices = @transform_11, window_bounds = array<i64: 64, 256>}, {pipeline_mode = #tpu.pipeline_mode<synchronous>, transform_indices = @transform_12, window_bounds = array<i64: 1, 256>}, {pipeline_mode = #tpu.pipeline_mode<synchronous>, transform_indices = @transform_13, window_bounds = array<i64: 256, 64>}, {pipeline_mode = #tpu.pipeline_mode<synchronous>, transform_indices = @transform_14, window_bounds = array<i64: 1, 64>}, {pipeline_mode = #tpu.pipeline_mode<synchronous>, transform_indices = @transform_15, window_bounds = array<i64: 1, 64>}, {transform_indices = @transform_16, window_bounds = array<i64: 1, 24, 64>}]} {
    %c0 = arith.constant 0 : index
    %c0_0 = arith.constant 0 : index
    %c0_1 = arith.constant 0 : index
    %0 = vector.load %arg1[%c0, %c0_0, %c0_1] : memref<1x24x64xf32, #tpu.memory_space<vmem>>, vector<1x24x64xf32>
    %1 = vector.shape_cast %0 : vector<1x24x64xf32> to vector<24x64xf32>
    %cst = arith.constant dense<0.000000e+00> : vector<24xf32>
    %2 = vector.multi_reduction <add>, %1, %cst [1] : vector<24x64xf32> to vector<24xf32>
    %3 = vector.shape_cast %2 : vector<24xf32> to vector<24x1xf32>
    %cst_2 = arith.constant 6.400000e+01 : f32
    %4 = vector.broadcast %cst_2 : f32 to vector<24x1xf32>
    %5 = arith.divf %3, %4 : vector<24x1xf32>
    %6 = vector.broadcast %5 : vector<24x1xf32> to vector<24x64xf32>
    %7 = arith.subf %1, %6 : vector<24x64xf32>
    %8 = arith.mulf %7, %7 : vector<24x64xf32>
    %cst_3 = arith.constant dense<0.000000e+00> : vector<24xf32>
    %9 = vector.multi_reduction <add>, %8, %cst_3 [1] : vector<24x64xf32> to vector<24xf32>
    %10 = vector.shape_cast %9 : vector<24xf32> to vector<24x1xf32>
    %cst_4 = arith.constant 6.400000e+01 : f32
    %11 = vector.broadcast %cst_4 : f32 to vector<24x1xf32>
    %12 = arith.divf %10, %11 : vector<24x1xf32>
    %cst_5 = arith.constant 9.99999974E-6 : f32
    %13 = vector.broadcast %cst_5 : f32 to vector<24x1xf32>
    %14 = arith.addf %12, %13 : vector<24x1xf32>
    %15 = math.rsqrt %14 : vector<24x1xf32>
    %16 = vector.broadcast %15 : vector<24x1xf32> to vector<24x64xf32>
    %17 = arith.mulf %7, %16 : vector<24x64xf32>
    %c0_6 = arith.constant 0 : index
    %c0_7 = arith.constant 0 : index
    %18 = vector.load %arg2[%c0_6, %c0_7] : memref<1x64xf32, #tpu.memory_space<vmem>>, vector<1x64xf32>
    %19 = vector.broadcast %18 : vector<1x64xf32> to vector<24x64xf32>
    %20 = arith.mulf %17, %19 : vector<24x64xf32>
    %c0_8 = arith.constant 0 : index
    %c0_9 = arith.constant 0 : index
    %21 = vector.load %arg3[%c0_8, %c0_9] : memref<1x64xf32, #tpu.memory_space<vmem>>, vector<1x64xf32>
    %22 = vector.broadcast %21 : vector<1x64xf32> to vector<24x64xf32>
    %23 = arith.addf %20, %22 : vector<24x64xf32>
    %24 = arith.truncf %23 : vector<24x64xf32> to vector<24x64xbf16>
    %c0_10 = arith.constant 0 : index
    %c0_11 = arith.constant 0 : index
    %25 = vector.load %arg4[%c0_10, %c0_11] : memref<64x192xbf16, #tpu.memory_space<vmem>>, vector<64x192xbf16>
    %cst_12 = arith.constant dense<0.000000e+00> : vector<24x192xf32>
    %26 = tpu.matmul %24, %25, %cst_12 {dimension_numbers = #tpu.dot_dimension_numbers<[1], [0], [0], [1], [0, 0, 1, 1], [], []>} : vector<24x64xbf16>, vector<64x192xbf16>, vector<24x192xf32> -> vector<24x192xf32>
    %c0_13 = arith.constant 0 : index
    %c0_14 = arith.constant 0 : index
    %27 = vector.load %arg5[%c0_13, %c0_14] : memref<1x192xf32, #tpu.memory_space<vmem>>, vector<1x192xf32>
    %28 = vector.broadcast %27 : vector<1x192xf32> to vector<24x192xf32>
    %29 = arith.addf %26, %28 : vector<24x192xf32>
    %30 = vector.extract_strided_slice %29 {offsets = [0, 0], sizes = [24, 64], strides = [1, 1]} : vector<24x192xf32> to vector<24x64xf32>
    %cst_15 = arith.constant 0.353553385 : f32
    %31 = vector.broadcast %cst_15 : f32 to vector<24x64xf32>
    %32 = arith.mulf %30, %31 : vector<24x64xf32>
    %33 = vector.extract_strided_slice %29 {offsets = [0, 64], sizes = [24, 64], strides = [1, 1]} : vector<24x192xf32> to vector<24x64xf32>
    %34 = vector.extract_strided_slice %29 {offsets = [0, 128], sizes = [24, 64], strides = [1, 1]} : vector<24x192xf32> to vector<24x64xf32>
    %35 = vector.extract_strided_slice %32 {offsets = [0, 0], sizes = [24, 8], strides = [1, 1]} : vector<24x64xf32> to vector<24x8xf32>
    %36 = arith.truncf %35 : vector<24x8xf32> to vector<24x8xbf16>
    %37 = vector.extract_strided_slice %33 {offsets = [0, 0], sizes = [24, 8], strides = [1, 1]} : vector<24x64xf32> to vector<24x8xf32>
    %38 = arith.truncf %37 : vector<24x8xf32> to vector<24x8xbf16>
    %39 = vector.extract_strided_slice %34 {offsets = [0, 0], sizes = [24, 8], strides = [1, 1]} : vector<24x64xf32> to vector<24x8xf32>
    %40 = arith.truncf %39 : vector<24x8xf32> to vector<24x8xbf16>
    %cst_16 = arith.constant dense<0.000000e+00> : vector<24x24xf32>
    %41 = tpu.matmul %36, %38, %cst_16 {dimension_numbers = #tpu.dot_dimension_numbers<[1], [1], [0], [0], [0, 0, 1, 0], [], []>} : vector<24x8xbf16>, vector<24x8xbf16>, vector<24x24xf32> -> vector<24x24xf32>
    %c0_17 = arith.constant 0 : index
    %c0_18 = arith.constant 0 : index
    %c0_19 = arith.constant 0 : index
    %42 = vector.load %arg6[%c0_17, %c0_18, %c0_19] : memref<8x24x24xf32, #tpu.memory_space<vmem>>, vector<1x24x24xf32>
    %43 = vector.shape_cast %42 : vector<1x24x24xf32> to vector<24x24xf32>
    %44 = arith.addf %41, %43 : vector<24x24xf32>
    %cst_20 = arith.constant dense<0xFF800000> : vector<24xf32>
    %45 = vector.multi_reduction <maximumf>, %44, %cst_20 [1] : vector<24x24xf32> to vector<24xf32>
    %46 = vector.shape_cast %45 : vector<24xf32> to vector<24x1xf32>
    %47 = vector.broadcast %46 : vector<24x1xf32> to vector<24x24xf32>
    %48 = arith.subf %44, %47 : vector<24x24xf32>
    %49 = math.exp %48 : vector<24x24xf32>
    %cst_21 = arith.constant dense<0.000000e+00> : vector<24xf32>
    %50 = vector.multi_reduction <add>, %49, %cst_21 [1] : vector<24x24xf32> to vector<24xf32>
    %51 = vector.shape_cast %50 : vector<24xf32> to vector<24x1xf32>
    %52 = tpu.reciprocal %51 {approx = true} : vector<24x1xf32> -> vector<24x1xf32>
    %53 = vector.broadcast %52 : vector<24x1xf32> to vector<24x24xf32>
    %54 = arith.mulf %49, %53 : vector<24x24xf32>
    %55 = arith.truncf %54 : vector<24x24xf32> to vector<24x24xbf16>
    %cst_22 = arith.constant dense<0.000000e+00> : vector<24x8xf32>
    %56 = tpu.matmul %55, %40, %cst_22 {dimension_numbers = #tpu.dot_dimension_numbers<[1], [0], [0], [1], [0, 0, 1, 1], [], []>} : vector<24x24xbf16>, vector<24x8xbf16>, vector<24x8xf32> -> vector<24x8xf32>
    %57 = vector.extract_strided_slice %32 {offsets = [0, 8], sizes = [24, 8], strides = [1, 1]} : vector<24x64xf32> to vector<24x8xf32>
    %58 = arith.truncf %57 : vector<24x8xf32> to vector<24x8xbf16>
    %59 = vector.extract_strided_slice %33 {offsets = [0, 8], sizes = [24, 8], strides = [1, 1]} : vector<24x64xf32> to vector<24x8xf32>
    %60 = arith.truncf %59 : vector<24x8xf32> to vector<24x8xbf16>
    %61 = vector.extract_strided_slice %34 {offsets = [0, 8], sizes = [24, 8], strides = [1, 1]} : vector<24x64xf32> to vector<24x8xf32>
    %62 = arith.truncf %61 : vector<24x8xf32> to vector<24x8xbf16>
    %cst_23 = arith.constant dense<0.000000e+00> : vector<24x24xf32>
    %63 = tpu.matmul %58, %60, %cst_23 {dimension_numbers = #tpu.dot_dimension_numbers<[1], [1], [0], [0], [0, 0, 1, 0], [], []>} : vector<24x8xbf16>, vector<24x8xbf16>, vector<24x24xf32> -> vector<24x24xf32>
    %c1 = arith.constant 1 : index
    %c0_24 = arith.constant 0 : index
    %c0_25 = arith.constant 0 : index
    %64 = vector.load %arg6[%c1, %c0_24, %c0_25] : memref<8x24x24xf32, #tpu.memory_space<vmem>>, vector<1x24x24xf32>
    %65 = vector.shape_cast %64 : vector<1x24x24xf32> to vector<24x24xf32>
    %66 = arith.addf %63, %65 : vector<24x24xf32>
    %cst_26 = arith.constant dense<0xFF800000> : vector<24xf32>
    %67 = vector.multi_reduction <maximumf>, %66, %cst_26 [1] : vector<24x24xf32> to vector<24xf32>
    %68 = vector.shape_cast %67 : vector<24xf32> to vector<24x1xf32>
    %69 = vector.broadcast %68 : vector<24x1xf32> to vector<24x24xf32>
    %70 = arith.subf %66, %69 : vector<24x24xf32>
    %71 = math.exp %70 : vector<24x24xf32>
    %cst_27 = arith.constant dense<0.000000e+00> : vector<24xf32>
    %72 = vector.multi_reduction <add>, %71, %cst_27 [1] : vector<24x24xf32> to vector<24xf32>
    %73 = vector.shape_cast %72 : vector<24xf32> to vector<24x1xf32>
    %74 = tpu.reciprocal %73 {approx = true} : vector<24x1xf32> -> vector<24x1xf32>
    %75 = vector.broadcast %74 : vector<24x1xf32> to vector<24x24xf32>
    %76 = arith.mulf %71, %75 : vector<24x24xf32>
    %77 = arith.truncf %76 : vector<24x24xf32> to vector<24x24xbf16>
    %cst_28 = arith.constant dense<0.000000e+00> : vector<24x8xf32>
    %78 = tpu.matmul %77, %62, %cst_28 {dimension_numbers = #tpu.dot_dimension_numbers<[1], [0], [0], [1], [0, 0, 1, 1], [], []>} : vector<24x24xbf16>, vector<24x8xbf16>, vector<24x8xf32> -> vector<24x8xf32>
    %79 = vector.extract_strided_slice %32 {offsets = [0, 16], sizes = [24, 8], strides = [1, 1]} : vector<24x64xf32> to vector<24x8xf32>
    %80 = arith.truncf %79 : vector<24x8xf32> to vector<24x8xbf16>
    %81 = vector.extract_strided_slice %33 {offsets = [0, 16], sizes = [24, 8], strides = [1, 1]} : vector<24x64xf32> to vector<24x8xf32>
    %82 = arith.truncf %81 : vector<24x8xf32> to vector<24x8xbf16>
    %83 = vector.extract_strided_slice %34 {offsets = [0, 16], sizes = [24, 8], strides = [1, 1]} : vector<24x64xf32> to vector<24x8xf32>
    %84 = arith.truncf %83 : vector<24x8xf32> to vector<24x8xbf16>
    %cst_29 = arith.constant dense<0.000000e+00> : vector<24x24xf32>
    %85 = tpu.matmul %80, %82, %cst_29 {dimension_numbers = #tpu.dot_dimension_numbers<[1], [1], [0], [0], [0, 0, 1, 0], [], []>} : vector<24x8xbf16>, vector<24x8xbf16>, vector<24x24xf32> -> vector<24x24xf32>
    %c2 = arith.constant 2 : index
    %c0_30 = arith.constant 0 : index
    %c0_31 = arith.constant 0 : index
    %86 = vector.load %arg6[%c2, %c0_30, %c0_31] : memref<8x24x24xf32, #tpu.memory_space<vmem>>, vector<1x24x24xf32>
    %87 = vector.shape_cast %86 : vector<1x24x24xf32> to vector<24x24xf32>
    %88 = arith.addf %85, %87 : vector<24x24xf32>
    %cst_32 = arith.constant dense<0xFF800000> : vector<24xf32>
    %89 = vector.multi_reduction <maximumf>, %88, %cst_32 [1] : vector<24x24xf32> to vector<24xf32>
    %90 = vector.shape_cast %89 : vector<24xf32> to vector<24x1xf32>
    %91 = vector.broadcast %90 : vector<24x1xf32> to vector<24x24xf32>
    %92 = arith.subf %88, %91 : vector<24x24xf32>
    %93 = math.exp %92 : vector<24x24xf32>
    %cst_33 = arith.constant dense<0.000000e+00> : vector<24xf32>
    %94 = vector.multi_reduction <add>, %93, %cst_33 [1] : vector<24x24xf32> to vector<24xf32>
    %95 = vector.shape_cast %94 : vector<24xf32> to vector<24x1xf32>
    %96 = tpu.reciprocal %95 {approx = true} : vector<24x1xf32> -> vector<24x1xf32>
    %97 = vector.broadcast %96 : vector<24x1xf32> to vector<24x24xf32>
    %98 = arith.mulf %93, %97 : vector<24x24xf32>
    %99 = arith.truncf %98 : vector<24x24xf32> to vector<24x24xbf16>
    %cst_34 = arith.constant dense<0.000000e+00> : vector<24x8xf32>
    %100 = tpu.matmul %99, %84, %cst_34 {dimension_numbers = #tpu.dot_dimension_numbers<[1], [0], [0], [1], [0, 0, 1, 1], [], []>} : vector<24x24xbf16>, vector<24x8xbf16>, vector<24x8xf32> -> vector<24x8xf32>
    %101 = vector.extract_strided_slice %32 {offsets = [0, 24], sizes = [24, 8], strides = [1, 1]} : vector<24x64xf32> to vector<24x8xf32>
    %102 = arith.truncf %101 : vector<24x8xf32> to vector<24x8xbf16>
    %103 = vector.extract_strided_slice %33 {offsets = [0, 24], sizes = [24, 8], strides = [1, 1]} : vector<24x64xf32> to vector<24x8xf32>
    %104 = arith.truncf %103 : vector<24x8xf32> to vector<24x8xbf16>
    %105 = vector.extract_strided_slice %34 {offsets = [0, 24], sizes = [24, 8], strides = [1, 1]} : vector<24x64xf32> to vector<24x8xf32>
    %106 = arith.truncf %105 : vector<24x8xf32> to vector<24x8xbf16>
    %cst_35 = arith.constant dense<0.000000e+00> : vector<24x24xf32>
    %107 = tpu.matmul %102, %104, %cst_35 {dimension_numbers = #tpu.dot_dimension_numbers<[1], [1], [0], [0], [0, 0, 1, 0], [], []>} : vector<24x8xbf16>, vector<24x8xbf16>, vector<24x24xf32> -> vector<24x24xf32>
    %c3 = arith.constant 3 : index
    %c0_36 = arith.constant 0 : index
    %c0_37 = arith.constant 0 : index
    %108 = vector.load %arg6[%c3, %c0_36, %c0_37] : memref<8x24x24xf32, #tpu.memory_space<vmem>>, vector<1x24x24xf32>
    %109 = vector.shape_cast %108 : vector<1x24x24xf32> to vector<24x24xf32>
    %110 = arith.addf %107, %109 : vector<24x24xf32>
    %cst_38 = arith.constant dense<0xFF800000> : vector<24xf32>
    %111 = vector.multi_reduction <maximumf>, %110, %cst_38 [1] : vector<24x24xf32> to vector<24xf32>
    %112 = vector.shape_cast %111 : vector<24xf32> to vector<24x1xf32>
    %113 = vector.broadcast %112 : vector<24x1xf32> to vector<24x24xf32>
    %114 = arith.subf %110, %113 : vector<24x24xf32>
    %115 = math.exp %114 : vector<24x24xf32>
    %cst_39 = arith.constant dense<0.000000e+00> : vector<24xf32>
    %116 = vector.multi_reduction <add>, %115, %cst_39 [1] : vector<24x24xf32> to vector<24xf32>
    %117 = vector.shape_cast %116 : vector<24xf32> to vector<24x1xf32>
    %118 = tpu.reciprocal %117 {approx = true} : vector<24x1xf32> -> vector<24x1xf32>
    %119 = vector.broadcast %118 : vector<24x1xf32> to vector<24x24xf32>
    %120 = arith.mulf %115, %119 : vector<24x24xf32>
    %121 = arith.truncf %120 : vector<24x24xf32> to vector<24x24xbf16>
    %cst_40 = arith.constant dense<0.000000e+00> : vector<24x8xf32>
    %122 = tpu.matmul %121, %106, %cst_40 {dimension_numbers = #tpu.dot_dimension_numbers<[1], [0], [0], [1], [0, 0, 1, 1], [], []>} : vector<24x24xbf16>, vector<24x8xbf16>, vector<24x8xf32> -> vector<24x8xf32>
    %123 = vector.extract_strided_slice %32 {offsets = [0, 32], sizes = [24, 8], strides = [1, 1]} : vector<24x64xf32> to vector<24x8xf32>
    %124 = arith.truncf %123 : vector<24x8xf32> to vector<24x8xbf16>
    %125 = vector.extract_strided_slice %33 {offsets = [0, 32], sizes = [24, 8], strides = [1, 1]} : vector<24x64xf32> to vector<24x8xf32>
    %126 = arith.truncf %125 : vector<24x8xf32> to vector<24x8xbf16>
    %127 = vector.extract_strided_slice %34 {offsets = [0, 32], sizes = [24, 8], strides = [1, 1]} : vector<24x64xf32> to vector<24x8xf32>
    %128 = arith.truncf %127 : vector<24x8xf32> to vector<24x8xbf16>
    %cst_41 = arith.constant dense<0.000000e+00> : vector<24x24xf32>
    %129 = tpu.matmul %124, %126, %cst_41 {dimension_numbers = #tpu.dot_dimension_numbers<[1], [1], [0], [0], [0, 0, 1, 0], [], []>} : vector<24x8xbf16>, vector<24x8xbf16>, vector<24x24xf32> -> vector<24x24xf32>
    %c4 = arith.constant 4 : index
    %c0_42 = arith.constant 0 : index
    %c0_43 = arith.constant 0 : index
    %130 = vector.load %arg6[%c4, %c0_42, %c0_43] : memref<8x24x24xf32, #tpu.memory_space<vmem>>, vector<1x24x24xf32>
    %131 = vector.shape_cast %130 : vector<1x24x24xf32> to vector<24x24xf32>
    %132 = arith.addf %129, %131 : vector<24x24xf32>
    %cst_44 = arith.constant dense<0xFF800000> : vector<24xf32>
    %133 = vector.multi_reduction <maximumf>, %132, %cst_44 [1] : vector<24x24xf32> to vector<24xf32>
    %134 = vector.shape_cast %133 : vector<24xf32> to vector<24x1xf32>
    %135 = vector.broadcast %134 : vector<24x1xf32> to vector<24x24xf32>
    %136 = arith.subf %132, %135 : vector<24x24xf32>
    %137 = math.exp %136 : vector<24x24xf32>
    %cst_45 = arith.constant dense<0.000000e+00> : vector<24xf32>
    %138 = vector.multi_reduction <add>, %137, %cst_45 [1] : vector<24x24xf32> to vector<24xf32>
    %139 = vector.shape_cast %138 : vector<24xf32> to vector<24x1xf32>
    %140 = tpu.reciprocal %139 {approx = true} : vector<24x1xf32> -> vector<24x1xf32>
    %141 = vector.broadcast %140 : vector<24x1xf32> to vector<24x24xf32>
    %142 = arith.mulf %137, %141 : vector<24x24xf32>
    %143 = arith.truncf %142 : vector<24x24xf32> to vector<24x24xbf16>
    %cst_46 = arith.constant dense<0.000000e+00> : vector<24x8xf32>
    %144 = tpu.matmul %143, %128, %cst_46 {dimension_numbers = #tpu.dot_dimension_numbers<[1], [0], [0], [1], [0, 0, 1, 1], [], []>} : vector<24x24xbf16>, vector<24x8xbf16>, vector<24x8xf32> -> vector<24x8xf32>
    %145 = vector.extract_strided_slice %32 {offsets = [0, 40], sizes = [24, 8], strides = [1, 1]} : vector<24x64xf32> to vector<24x8xf32>
    %146 = arith.truncf %145 : vector<24x8xf32> to vector<24x8xbf16>
    %147 = vector.extract_strided_slice %33 {offsets = [0, 40], sizes = [24, 8], strides = [1, 1]} : vector<24x64xf32> to vector<24x8xf32>
    %148 = arith.truncf %147 : vector<24x8xf32> to vector<24x8xbf16>
    %149 = vector.extract_strided_slice %34 {offsets = [0, 40], sizes = [24, 8], strides = [1, 1]} : vector<24x64xf32> to vector<24x8xf32>
    %150 = arith.truncf %149 : vector<24x8xf32> to vector<24x8xbf16>
    %cst_47 = arith.constant dense<0.000000e+00> : vector<24x24xf32>
    %151 = tpu.matmul %146, %148, %cst_47 {dimension_numbers = #tpu.dot_dimension_numbers<[1], [1], [0], [0], [0, 0, 1, 0], [], []>} : vector<24x8xbf16>, vector<24x8xbf16>, vector<24x24xf32> -> vector<24x24xf32>
    %c5 = arith.constant 5 : index
    %c0_48 = arith.constant 0 : index
    %c0_49 = arith.constant 0 : index
    %152 = vector.load %arg6[%c5, %c0_48, %c0_49] : memref<8x24x24xf32, #tpu.memory_space<vmem>>, vector<1x24x24xf32>
    %153 = vector.shape_cast %152 : vector<1x24x24xf32> to vector<24x24xf32>
    %154 = arith.addf %151, %153 : vector<24x24xf32>
    %cst_50 = arith.constant dense<0xFF800000> : vector<24xf32>
    %155 = vector.multi_reduction <maximumf>, %154, %cst_50 [1] : vector<24x24xf32> to vector<24xf32>
    %156 = vector.shape_cast %155 : vector<24xf32> to vector<24x1xf32>
    %157 = vector.broadcast %156 : vector<24x1xf32> to vector<24x24xf32>
    %158 = arith.subf %154, %157 : vector<24x24xf32>
    %159 = math.exp %158 : vector<24x24xf32>
    %cst_51 = arith.constant dense<0.000000e+00> : vector<24xf32>
    %160 = vector.multi_reduction <add>, %159, %cst_51 [1] : vector<24x24xf32> to vector<24xf32>
    %161 = vector.shape_cast %160 : vector<24xf32> to vector<24x1xf32>
    %162 = tpu.reciprocal %161 {approx = true} : vector<24x1xf32> -> vector<24x1xf32>
    %163 = vector.broadcast %162 : vector<24x1xf32> to vector<24x24xf32>
    %164 = arith.mulf %159, %163 : vector<24x24xf32>
    %165 = arith.truncf %164 : vector<24x24xf32> to vector<24x24xbf16>
    %cst_52 = arith.constant dense<0.000000e+00> : vector<24x8xf32>
    %166 = tpu.matmul %165, %150, %cst_52 {dimension_numbers = #tpu.dot_dimension_numbers<[1], [0], [0], [1], [0, 0, 1, 1], [], []>} : vector<24x24xbf16>, vector<24x8xbf16>, vector<24x8xf32> -> vector<24x8xf32>
    %167 = vector.extract_strided_slice %32 {offsets = [0, 48], sizes = [24, 8], strides = [1, 1]} : vector<24x64xf32> to vector<24x8xf32>
    %168 = arith.truncf %167 : vector<24x8xf32> to vector<24x8xbf16>
    %169 = vector.extract_strided_slice %33 {offsets = [0, 48], sizes = [24, 8], strides = [1, 1]} : vector<24x64xf32> to vector<24x8xf32>
    %170 = arith.truncf %169 : vector<24x8xf32> to vector<24x8xbf16>
    %171 = vector.extract_strided_slice %34 {offsets = [0, 48], sizes = [24, 8], strides = [1, 1]} : vector<24x64xf32> to vector<24x8xf32>
    %172 = arith.truncf %171 : vector<24x8xf32> to vector<24x8xbf16>
    %cst_53 = arith.constant dense<0.000000e+00> : vector<24x24xf32>
    %173 = tpu.matmul %168, %170, %cst_53 {dimension_numbers = #tpu.dot_dimension_numbers<[1], [1], [0], [0], [0, 0, 1, 0], [], []>} : vector<24x8xbf16>, vector<24x8xbf16>, vector<24x24xf32> -> vector<24x24xf32>
    %c6 = arith.constant 6 : index
    %c0_54 = arith.constant 0 : index
    %c0_55 = arith.constant 0 : index
    %174 = vector.load %arg6[%c6, %c0_54, %c0_55] : memref<8x24x24xf32, #tpu.memory_space<vmem>>, vector<1x24x24xf32>
    %175 = vector.shape_cast %174 : vector<1x24x24xf32> to vector<24x24xf32>
    %176 = arith.addf %173, %175 : vector<24x24xf32>
    %cst_56 = arith.constant dense<0xFF800000> : vector<24xf32>
    %177 = vector.multi_reduction <maximumf>, %176, %cst_56 [1] : vector<24x24xf32> to vector<24xf32>
    %178 = vector.shape_cast %177 : vector<24xf32> to vector<24x1xf32>
    %179 = vector.broadcast %178 : vector<24x1xf32> to vector<24x24xf32>
    %180 = arith.subf %176, %179 : vector<24x24xf32>
    %181 = math.exp %180 : vector<24x24xf32>
    %cst_57 = arith.constant dense<0.000000e+00> : vector<24xf32>
    %182 = vector.multi_reduction <add>, %181, %cst_57 [1] : vector<24x24xf32> to vector<24xf32>
    %183 = vector.shape_cast %182 : vector<24xf32> to vector<24x1xf32>
    %184 = tpu.reciprocal %183 {approx = true} : vector<24x1xf32> -> vector<24x1xf32>
    %185 = vector.broadcast %184 : vector<24x1xf32> to vector<24x24xf32>
    %186 = arith.mulf %181, %185 : vector<24x24xf32>
    %187 = arith.truncf %186 : vector<24x24xf32> to vector<24x24xbf16>
    %cst_58 = arith.constant dense<0.000000e+00> : vector<24x8xf32>
    %188 = tpu.matmul %187, %172, %cst_58 {dimension_numbers = #tpu.dot_dimension_numbers<[1], [0], [0], [1], [0, 0, 1, 1], [], []>} : vector<24x24xbf16>, vector<24x8xbf16>, vector<24x8xf32> -> vector<24x8xf32>
    %189 = vector.extract_strided_slice %32 {offsets = [0, 56], sizes = [24, 8], strides = [1, 1]} : vector<24x64xf32> to vector<24x8xf32>
    %190 = arith.truncf %189 : vector<24x8xf32> to vector<24x8xbf16>
    %191 = vector.extract_strided_slice %33 {offsets = [0, 56], sizes = [24, 8], strides = [1, 1]} : vector<24x64xf32> to vector<24x8xf32>
    %192 = arith.truncf %191 : vector<24x8xf32> to vector<24x8xbf16>
    %193 = vector.extract_strided_slice %34 {offsets = [0, 56], sizes = [24, 8], strides = [1, 1]} : vector<24x64xf32> to vector<24x8xf32>
    %194 = arith.truncf %193 : vector<24x8xf32> to vector<24x8xbf16>
    %cst_59 = arith.constant dense<0.000000e+00> : vector<24x24xf32>
    %195 = tpu.matmul %190, %192, %cst_59 {dimension_numbers = #tpu.dot_dimension_numbers<[1], [1], [0], [0], [0, 0, 1, 0], [], []>} : vector<24x8xbf16>, vector<24x8xbf16>, vector<24x24xf32> -> vector<24x24xf32>
    %c7 = arith.constant 7 : index
    %c0_60 = arith.constant 0 : index
    %c0_61 = arith.constant 0 : index
    %196 = vector.load %arg6[%c7, %c0_60, %c0_61] : memref<8x24x24xf32, #tpu.memory_space<vmem>>, vector<1x24x24xf32>
    %197 = vector.shape_cast %196 : vector<1x24x24xf32> to vector<24x24xf32>
    %198 = arith.addf %195, %197 : vector<24x24xf32>
    %cst_62 = arith.constant dense<0xFF800000> : vector<24xf32>
    %199 = vector.multi_reduction <maximumf>, %198, %cst_62 [1] : vector<24x24xf32> to vector<24xf32>
    %200 = vector.shape_cast %199 : vector<24xf32> to vector<24x1xf32>
    %201 = vector.broadcast %200 : vector<24x1xf32> to vector<24x24xf32>
    %202 = arith.subf %198, %201 : vector<24x24xf32>
    %203 = math.exp %202 : vector<24x24xf32>
    %cst_63 = arith.constant dense<0.000000e+00> : vector<24xf32>
    %204 = vector.multi_reduction <add>, %203, %cst_63 [1] : vector<24x24xf32> to vector<24xf32>
    %205 = vector.shape_cast %204 : vector<24xf32> to vector<24x1xf32>
    %206 = tpu.reciprocal %205 {approx = true} : vector<24x1xf32> -> vector<24x1xf32>
    %207 = vector.broadcast %206 : vector<24x1xf32> to vector<24x24xf32>
    %208 = arith.mulf %203, %207 : vector<24x24xf32>
    %209 = arith.truncf %208 : vector<24x24xf32> to vector<24x24xbf16>
    %cst_64 = arith.constant dense<0.000000e+00> : vector<24x8xf32>
    %210 = tpu.matmul %209, %194, %cst_64 {dimension_numbers = #tpu.dot_dimension_numbers<[1], [0], [0], [1], [0, 0, 1, 1], [], []>} : vector<24x24xbf16>, vector<24x8xbf16>, vector<24x8xf32> -> vector<24x8xf32>
    %211 = tpu.concatenate %56, %78, %100, %122, %144, %166, %188, %210 in 1 : vector<24x8xf32>, vector<24x8xf32>, vector<24x8xf32>, vector<24x8xf32>, vector<24x8xf32>, vector<24x8xf32>, vector<24x8xf32>, vector<24x8xf32> -> vector<24x64xf32>
    %212 = arith.truncf %211 : vector<24x64xf32> to vector<24x64xbf16>
    %c0_65 = arith.constant 0 : index
    %c0_66 = arith.constant 0 : index
    %213 = vector.load %arg7[%c0_65, %c0_66] : memref<64x64xbf16, #tpu.memory_space<vmem>>, vector<64x64xbf16>
    %cst_67 = arith.constant dense<0.000000e+00> : vector<24x64xf32>
    %214 = tpu.matmul %212, %213, %cst_67 {dimension_numbers = #tpu.dot_dimension_numbers<[1], [0], [0], [1], [0, 0, 1, 1], [], []>} : vector<24x64xbf16>, vector<64x64xbf16>, vector<24x64xf32> -> vector<24x64xf32>
    %c0_68 = arith.constant 0 : index
    %c0_69 = arith.constant 0 : index
    %215 = vector.load %arg8[%c0_68, %c0_69] : memref<1x64xf32, #tpu.memory_space<vmem>>, vector<1x64xf32>
    %216 = vector.broadcast %215 : vector<1x64xf32> to vector<24x64xf32>
    %217 = arith.addf %214, %216 : vector<24x64xf32>
    %c0_70 = arith.constant 0 : index
    %c0_71 = arith.constant 0 : index
    %218 = vector.load %arg9[%c0_70, %c0_71] : memref<1x64xf32, #tpu.memory_space<vmem>>, vector<1x64xf32>
    %219 = vector.broadcast %218 : vector<1x64xf32> to vector<24x64xf32>
    %220 = arith.mulf %219, %217 : vector<24x64xf32>
    %221 = arith.addf %1, %220 : vector<24x64xf32>
    %cst_72 = arith.constant dense<0.000000e+00> : vector<24xf32>
    %222 = vector.multi_reduction <add>, %221, %cst_72 [1] : vector<24x64xf32> to vector<24xf32>
    %223 = vector.shape_cast %222 : vector<24xf32> to vector<24x1xf32>
    %cst_73 = arith.constant 6.400000e+01 : f32
    %224 = vector.broadcast %cst_73 : f32 to vector<24x1xf32>
    %225 = arith.divf %223, %224 : vector<24x1xf32>
    %226 = vector.broadcast %225 : vector<24x1xf32> to vector<24x64xf32>
    %227 = arith.subf %221, %226 : vector<24x64xf32>
    %228 = arith.mulf %227, %227 : vector<24x64xf32>
    %cst_74 = arith.constant dense<0.000000e+00> : vector<24xf32>
    %229 = vector.multi_reduction <add>, %228, %cst_74 [1] : vector<24x64xf32> to vector<24xf32>
    %230 = vector.shape_cast %229 : vector<24xf32> to vector<24x1xf32>
    %cst_75 = arith.constant 6.400000e+01 : f32
    %231 = vector.broadcast %cst_75 : f32 to vector<24x1xf32>
    %232 = arith.divf %230, %231 : vector<24x1xf32>
    %cst_76 = arith.constant 9.99999974E-6 : f32
    %233 = vector.broadcast %cst_76 : f32 to vector<24x1xf32>
    %234 = arith.addf %232, %233 : vector<24x1xf32>
    %235 = math.rsqrt %234 : vector<24x1xf32>
    %236 = vector.broadcast %235 : vector<24x1xf32> to vector<24x64xf32>
    %237 = arith.mulf %227, %236 : vector<24x64xf32>
    %c0_77 = arith.constant 0 : index
    %c0_78 = arith.constant 0 : index
    %238 = vector.load %arg10[%c0_77, %c0_78] : memref<1x64xf32, #tpu.memory_space<vmem>>, vector<1x64xf32>
    %239 = vector.broadcast %238 : vector<1x64xf32> to vector<24x64xf32>
    %240 = arith.mulf %237, %239 : vector<24x64xf32>
    %c0_79 = arith.constant 0 : index
    %c0_80 = arith.constant 0 : index
    %241 = vector.load %arg11[%c0_79, %c0_80] : memref<1x64xf32, #tpu.memory_space<vmem>>, vector<1x64xf32>
    %242 = vector.broadcast %241 : vector<1x64xf32> to vector<24x64xf32>
    %243 = arith.addf %240, %242 : vector<24x64xf32>
    %244 = arith.truncf %243 : vector<24x64xf32> to vector<24x64xbf16>
    %c0_81 = arith.constant 0 : index
    %c0_82 = arith.constant 0 : index
    %245 = vector.load %arg12[%c0_81, %c0_82] : memref<64x256xbf16, #tpu.memory_space<vmem>>, vector<64x256xbf16>
    %cst_83 = arith.constant dense<0.000000e+00> : vector<24x256xf32>
    %246 = tpu.matmul %244, %245, %cst_83 {dimension_numbers = #tpu.dot_dimension_numbers<[1], [0], [0], [1], [0, 0, 1, 1], [], []>} : vector<24x64xbf16>, vector<64x256xbf16>, vector<24x256xf32> -> vector<24x256xf32>
    %c0_84 = arith.constant 0 : index
    %c0_85 = arith.constant 0 : index
    %247 = vector.load %arg13[%c0_84, %c0_85] : memref<1x256xf32, #tpu.memory_space<vmem>>, vector<1x256xf32>
    %248 = vector.broadcast %247 : vector<1x256xf32> to vector<24x256xf32>
    %249 = arith.addf %246, %248 : vector<24x256xf32>
    %cst_86 = arith.constant 5.000000e-01 : f32
    %250 = vector.broadcast %cst_86 : f32 to vector<24x256xf32>
    %251 = arith.mulf %250, %249 : vector<24x256xf32>
    %cst_87 = arith.constant 4.471500e-02 : f32
    %252 = vector.broadcast %cst_87 : f32 to vector<24x256xf32>
    %253 = arith.mulf %252, %249 : vector<24x256xf32>
    %254 = arith.mulf %253, %249 : vector<24x256xf32>
    %255 = arith.mulf %254, %249 : vector<24x256xf32>
    %256 = arith.addf %249, %255 : vector<24x256xf32>
    %cst_88 = arith.constant 0.797884583 : f32
    %257 = vector.broadcast %cst_88 : f32 to vector<24x256xf32>
    %258 = arith.mulf %257, %256 : vector<24x256xf32>
    %259 = math.tanh %258 : vector<24x256xf32>
    %cst_89 = arith.constant 1.000000e+00 : f32
    %260 = vector.broadcast %cst_89 : f32 to vector<24x256xf32>
    %261 = arith.addf %260, %259 : vector<24x256xf32>
    %262 = arith.mulf %251, %261 : vector<24x256xf32>
    %263 = arith.truncf %262 : vector<24x256xf32> to vector<24x256xbf16>
    %c0_90 = arith.constant 0 : index
    %c0_91 = arith.constant 0 : index
    %264 = vector.load %arg14[%c0_90, %c0_91] : memref<256x64xbf16, #tpu.memory_space<vmem>>, vector<256x64xbf16>
    %cst_92 = arith.constant dense<0.000000e+00> : vector<24x64xf32>
    %265 = tpu.matmul %263, %264, %cst_92 {dimension_numbers = #tpu.dot_dimension_numbers<[1], [0], [0], [1], [0, 0, 1, 1], [], []>} : vector<24x256xbf16>, vector<256x64xbf16>, vector<24x64xf32> -> vector<24x64xf32>
    %c0_93 = arith.constant 0 : index
    %c0_94 = arith.constant 0 : index
    %266 = vector.load %arg15[%c0_93, %c0_94] : memref<1x64xf32, #tpu.memory_space<vmem>>, vector<1x64xf32>
    %267 = vector.broadcast %266 : vector<1x64xf32> to vector<24x64xf32>
    %268 = arith.addf %265, %267 : vector<24x64xf32>
    %c0_95 = arith.constant 0 : index
    %c0_96 = arith.constant 0 : index
    %269 = vector.load %arg16[%c0_95, %c0_96] : memref<1x64xf32, #tpu.memory_space<vmem>>, vector<1x64xf32>
    %270 = vector.broadcast %269 : vector<1x64xf32> to vector<24x64xf32>
    %271 = arith.mulf %270, %268 : vector<24x64xf32>
    %272 = arith.addf %221, %271 : vector<24x64xf32>
    %c0_97 = arith.constant 0 : index
    %c0_98 = arith.constant 0 : index
    %c0_99 = arith.constant 0 : index
    %273 = vector.load %arg17[%c0_97, %c0_98, %c0_99] : memref<1x24x64xf32, #tpu.memory_space<vmem>>, vector<1x24x64xf32>
    %274 = vector.shape_cast %273 : vector<1x24x64xf32> to vector<24x64xf32>
    %275 = vector.shape_cast %272 : vector<24x64xf32> to vector<1x24x64xf32>
    tpu.vector_store %arg17[%c0_97, %c0_98, %c0_99], %275 {strides = array<i32>} : memref<1x24x64xf32, #tpu.memory_space<vmem>>, vector<1x24x64xf32>,
    return
  }
  func.func @transform_0(%arg0: i32) -> (i32, i32, i32) {
    %c0_i32 = arith.constant 0 : i32
    %c0_i32_0 = arith.constant 0 : i32
    %c0_i32_1 = arith.constant 0 : i32
    return %arg0, %c0_i32, %c0_i32_0 : i32, i32, i32
  }
  func.func @transform_1(%arg0: i32) -> (i32, i32) {
    %c0_i32 = arith.constant 0 : i32
    %c0_i32_0 = arith.constant 0 : i32
    %c0_i32_1 = arith.constant 0 : i32
    return %c0_i32, %c0_i32_0 : i32, i32
  }
  func.func @transform_2(%arg0: i32) -> (i32, i32) {
    %c0_i32 = arith.constant 0 : i32
    %c0_i32_0 = arith.constant 0 : i32
    %c0_i32_1 = arith.constant 0 : i32
    return %c0_i32, %c0_i32_0 : i32, i32
  }
  func.func @transform_3(%arg0: i32) -> (i32, i32) {
    %c0_i32 = arith.constant 0 : i32
    %c0_i32_0 = arith.constant 0 : i32
    %c0_i32_1 = arith.constant 0 : i32
    return %c0_i32, %c0_i32_0 : i32, i32
  }
  func.func @transform_4(%arg0: i32) -> (i32, i32) {
    %c0_i32 = arith.constant 0 : i32
    %c0_i32_0 = arith.constant 0 : i32
    %c0_i32_1 = arith.constant 0 : i32
    return %c0_i32, %c0_i32_0 : i32, i32
  }
  func.func @transform_5(%arg0: i32) -> (i32, i32, i32) {
    %c0_i32 = arith.constant 0 : i32
    %c0_i32_0 = arith.constant 0 : i32
    %c0_i32_1 = arith.constant 0 : i32
    %c0_i32_2 = arith.constant 0 : i32
    return %c0_i32, %c0_i32_0, %c0_i32_1 : i32, i32, i32
  }
  func.func @transform_6(%arg0: i32) -> (i32, i32) {
    %c0_i32 = arith.constant 0 : i32
    %c0_i32_0 = arith.constant 0 : i32
    %c0_i32_1 = arith.constant 0 : i32
    return %c0_i32, %c0_i32_0 : i32, i32
  }
  func.func @transform_7(%arg0: i32) -> (i32, i32) {
    %c0_i32 = arith.constant 0 : i32
    %c0_i32_0 = arith.constant 0 : i32
    %c0_i32_1 = arith.constant 0 : i32
    return %c0_i32, %c0_i32_0 : i32, i32
  }
  func.func @transform_8(%arg0: i32) -> (i32, i32) {
    %c0_i32 = arith.constant 0 : i32
    %c0_i32_0 = arith.constant 0 : i32
    %c0_i32_1 = arith.constant 0 : i32
    return %c0_i32, %c0_i32_0 : i32, i32
  }
  func.func @transform_9(%arg0: i32) -> (i32, i32) {
    %c0_i32 = arith.constant 0 : i32
    %c0_i32_0 = arith.constant 0 : i32
    %c0_i32_1 = arith.constant 0 : i32
    return %c0_i32, %c0_i32_0 : i32, i32
  }
  func.func @transform_10(%arg0: i32) -> (i32, i32) {
    %c0_i32 = arith.constant 0 : i32
    %c0_i32_0 = arith.constant 0 : i32
    %c0_i32_1 = arith.constant 0 : i32
    return %c0_i32, %c0_i32_0 : i32, i32
  }
  func.func @transform_11(%arg0: i32) -> (i32, i32) {
    %c0_i32 = arith.constant 0 : i32
    %c0_i32_0 = arith.constant 0 : i32
    %c0_i32_1 = arith.constant 0 : i32
    return %c0_i32, %c0_i32_0 : i32, i32
  }
  func.func @transform_12(%arg0: i32) -> (i32, i32) {
    %c0_i32 = arith.constant 0 : i32
    %c0_i32_0 = arith.constant 0 : i32
    %c0_i32_1 = arith.constant 0 : i32
    return %c0_i32, %c0_i32_0 : i32, i32
  }
  func.func @transform_13(%arg0: i32) -> (i32, i32) {
    %c0_i32 = arith.constant 0 : i32
    %c0_i32_0 = arith.constant 0 : i32
    %c0_i32_1 = arith.constant 0 : i32
    return %c0_i32, %c0_i32_0 : i32, i32
  }
  func.func @transform_14(%arg0: i32) -> (i32, i32) {
    %c0_i32 = arith.constant 0 : i32
    %c0_i32_0 = arith.constant 0 : i32
    %c0_i32_1 = arith.constant 0 : i32
    return %c0_i32, %c0_i32_0 : i32, i32
  }
  func.func @transform_15(%arg0: i32) -> (i32, i32) {
    %c0_i32 = arith.constant 0 : i32
    %c0_i32_0 = arith.constant 0 : i32
    %c0_i32_1 = arith.constant 0 : i32
    return %c0_i32, %c0_i32_0 : i32, i32
  }
  func.func @transform_16(%arg0: i32) -> (i32, i32, i32) {
    %c0_i32 = arith.constant 0 : i32
    %c0_i32_0 = arith.constant 0 : i32
    %c0_i32_1 = arith.constant 0 : i32
    return %arg0, %c0_i32, %c0_i32_0 : i32, i32, i32
  }
}

</mosaic_0001>

<bundles_post_ra>
// kernel: tpu_custom_call.1
= control target key start
LH: loop header
LB: loop body
LE: loop exit
PB: predicated region body
PF: predicated region fallthrough
CT: control target
= control target key end

     0   :  { %s4661_s0 = inlined_call_operand.hbm [shape: f32[2,24,64], index: 0, kind: input, shape index: {}]   ;;  %s4662_s1 = inlined_call_operand.vmem [shape: f32[1,64], index: 1, kind: input, shape index: {}]   ;;  %s4663_s2 = inlined_call_operand.vmem [shape: f32[1,64], index: 2, kind: input, shape index: {}]   ;;  %s4664_s3 = inlined_call_operand.hbm [shape: bf16[64,192], index: 3, kind: input, shape index: {}]   ;;  %s4665_s4 = inlined_call_operand.vmem [shape: f32[1,192], index: 4, kind: input, shape index: {}]   ;;  %s4666_s5 = inlined_call_operand.vmem [shape: f32[8,24,24], index: 5, kind: input, shape index: {}]   ;;  %s4667_s6 = inlined_call_operand.hbm [shape: bf16[64,64], index: 6, kind: input, shape index: {}]   ;;  %s4668_s7 = inlined_call_operand.vmem [shape: f32[1,64], index: 7, kind: input, shape index: {}]   ;;  %s4669_s8 = inlined_call_operand.vmem [shape: f32[1,64], index: 8, kind: input, shape index: {}]   ;;  %s4670_s9 = inlined_call_operand.vmem [shape: f32[1,64], index: 9, kind: input, shape index: {}]   ;;  %s4671_s10 = inlined_call_operand.vmem [shape: f32[1,64], index: 10, kind: input, shape index: {}]   ;;  %s4672_s11 = inlined_call_operand.hbm [shape: bf16[64,256], index: 11, kind: input, shape index: {}]   ;;  %s4673_s12 = inlined_call_operand.vmem [shape: f32[1,256], index: 12, kind: input, shape index: {}]   ;;  %s4674_s13 = inlined_call_operand.vmem [shape: bf16[256,64], index: 13, kind: input, shape index: {}]   ;;  %s4675_s14 = inlined_call_operand.vmem [shape: f32[1,64], index: 14, kind: input, shape index: {}]   ;;  %s4676_s15 = inlined_call_operand.vmem [shape: f32[1,64], index: 15, kind: input, shape index: {}]   ;;  %s4677_s16 = inlined_call_operand.hbm [shape: f32[2,24,64], index: 16, kind: output, shape index: {}]  }
   0x1   :  { %4696 = sst [smem:[#allocation22_spill]] %s4661_s0 }
   0x2   :  { %4697 = sst [smem:[#allocation23_spill]] %s4664_s3 }
   0x3   :  { %4698 = sst [smem:[#allocation24_spill]] %s4667_s6 }
   0x4   :  { %4699 = sst [smem:[#allocation25_spill]] %s4672_s11 }
   0x5   :  { %4700 = sst [smem:[#allocation26_spill]] %s4676_s15 }
   0x6   :  { %4701 = sst [smem:[#allocation27_spill]] %s4677_s16 }
   0x7   :  { %21 = vsyncpa [#allocation3], 0 }
   0x8   :  { %23 = vsyncpa [#allocation3 + $0x1], 0 }
   0x9   :  { %24 = vsyncpa [#allocation6], 0 }
   0xa   :  { %25 = vsyncpa [#allocation9], 0 }
   0xb   :  { %26 = vsyncpa [#allocation4], 0 }
   0xc   :  { %28 = vsyncpa [#allocation4 + $0x1], 0  ;;  %s3871_s21 = smov 0   ;;  %s3873_s22 = smov 0  }
   0xd   :  { %s3875_s23 = smov 0   ;;  %s3877_s24 = smov 0  }
   0xe LB: > { %4702 = sst [smem:[#allocation15_spill]] %s3746_s21  ;;  %s3892_s25 = sadd.s32 4294967295, %s3758_s24   ;;  %s3758_s24 = sphi %s3877_s24, %s4736_s24   ;;  %s3754_s23 = sphi %s3875_s23, %s4741_s23   ;;  %s3750_s22 = sphi %s3873_s22, %s4740_s22   ;;  %s3746_s21 = sphi %s3871_s21, %s4739_s21  }
   0xf   : > { %4703 = sst [smem:[#allocation16_spill]] %s3754_s23  ;;  %s2897_s26 = sadd.s32 4294967294, %s3758_s24  }
  0x10   : > { %4704 = sst [smem:[#allocation17_spill]] %s3758_s24  ;;  %p54_p0 = scmp.ne.s32.totalorder %s3750_s22, %s3746_s21 }
  0x11   : > { %p4692_p1 = scmp.eq.s32.totalorder %s3892_s25, 0  ;;  %p393_p2 = scmp.eq.s32.totalorder %s3892_s25, 1 }
  0x12   : > { %p399_p3 = scmp.eq.s32.totalorder %s2897_s26, 1  ;;  %p2898_p5 = scmp.ge.s32.totalorder %s3758_s24, 1 }
  0x13   : > { %p3901_p4 = por %p4692_p1, %p54_p0  ;;  %p406_p7 = scmp.lt.s32.totalorder %s3758_s24, 3 }
  0x14   : > { %p3906_p6 = por %p399_p3, %p54_p0  ;;  %s3760_s30 = smov [#allocation5]  }
  0x15   : > { %s4705_s27 = scalar_select %p3901_p4, 1, 0 }
  0x16   : > { %s4706_s28 = scalar_select %p3906_p6, 1, 0 }
  0x17   : > { %p3911_p8 = pnand %p2898_p5, %p406_p7  ;;  %s424_s0 = sshll.u32 %s3760_s30, 4  ;;  %s425_s0 = int_to_ptr.vmem [resolvable:$true] %s424_s0 }
  0x18   : > { %4707 = sst [smem:[#allocation18_spill]] %s4706_s28  ;;  %s3761_s18 = smov [#allocation7]  }
  0x19   : > { %s4708_s29 = scalar_select %p3911_p8, 1, 0 }
  0x1a   : > { %p3296_p9 = pneg %p3911_p8  ;;  %s443_s19 = sshll.u32 %s3761_s18, 4  ;;  %s444_s19 = int_to_ptr.vmem [resolvable:$true] %s443_s19 }
  0x1b   : > { %s3591_s20 = scalar_lea.vmem %s425_s0, 1024  ;;  %p3599_p5 = scmp.lt.s32.totalorder %s425_s0, %s425_s0 }
  0x1c   : > { %p3920_p11 = pnand %p3296_p9, %p4692_p1  ;;  %p3592_p13 = scmp.ne.s32.totalorder %s425_s0, %s3591_s20 }
  0x1d   : > { %p3600_p7 = scmp.lt.s32.totalorder %s3591_s20, %s3591_s20 }
  0x1e   : > { %p3582_p12 = pneg %p3920_p11 }
  0x1f   : > { %p3601_p10 = por %p3600_p7, %p3599_p5 }
  0x20   : > { %p3594_p0 = pnand %p3592_p13, %p3582_p12 }
  0x22   : > { %p3595_p3 = pneg %p3594_p0 }
  0x24   : > { %p3602_p9 = pnand %p3601_p10, %p3595_p3 }
  0x26   : > { %3605 = shalt.err (!%p3602_p9)
}
  0x27   : > { %s4682_s26 = smov 128   ;;  %s4684_s30 = smov 8  }
  0x28   : > { %s4710_s3 = sld [smem:[#allocation23_spill]]  ;;  %s3617_s21 = scalar_lea.vmem %s444_s19, 512 }
  0x29   : > { %p3618_p13 = scmp.ne.s32.totalorder %s444_s19, %s3617_s21  ;;  %p3625_p10 = scmp.lt.s32.totalorder %s444_s19, %s444_s19 }
  0x2a   : > { %p3626_p3 = scmp.lt.s32.totalorder %s3617_s21, %s3617_s21 }
  0x2b   : > { %p3620_p0 = pnand %p3618_p13, %p3582_p12 }
  0x2c   : > { %p3627_p7 = por %p3626_p3, %p3625_p10 }
  0x2d   : > { %p3621_p5 = pneg %p3620_p0 }
  0x2e   : > { %3299 = dma.hbm_to_vmem [thread:$0]  (!%p3920_p11), %s4710_s3, 1024, %s425_s0, [#allocation6], %s4682_s26, %s4682_s26, %s4684_s30  }
  0x2f   : > { %p3628_p9 = pnand %p3627_p7, %p3621_p5 }
  0x31   : > { %3631 = shalt.err (!%p3628_p9)
}
  0x32   : > { %s3764_s20 = smov 64   ;;  %s3765_s16 = smov 4  }
  0x33   : > { %s4711_s6 = sld [smem:[#allocation24_spill]]  ;;  %s3766_s0 = smov [#allocation8]  }
  0x34   : > { %s468_s18 = sshll.u32 %s3766_s0, 4  ;;  %s3946_s26 = sadd.s32 1, %s3758_s24   ;;  %s469_s18 = int_to_ptr.vmem [resolvable:$true] %s468_s18 }
  0x35   : > { %4712 = sst [smem:[#allocation19_spill]] %s3946_s26  ;;  %s3643_s30 = scalar_lea.vmem %s469_s18, 1024 }
  0x36   : > { %p3644_p13 = scmp.ne.s32.totalorder %s469_s18, %s3643_s30  ;;  %p3651_p10 = scmp.lt.s32.totalorder %s469_s18, %s469_s18 }
  0x37   : > { %p3652_p3 = scmp.lt.s32.totalorder %s3643_s30, %s3643_s30 }
  0x38   : > { %p3646_p0 = pnand %p3644_p13, %p3582_p12 }
  0x39   : > { %3302 = dma.hbm_to_vmem [thread:$0]  (!%p3920_p11), %s4711_s6, 512, %s444_s19, [#allocation6], %s3764_s20, %s3764_s20, %s3765_s16  }
  0x3a   : > { %p3647_p5 = pneg %p3646_p0  ;;  %p3653_p7 = por %p3652_p3, %p3651_p10 }
  0x3c   : > { %p3654_p9 = pnand %p3653_p7, %p3647_p5 }
  0x3e   : > { %3657 = shalt.err (!%p3654_p9)
}
  0x3f   : > { %s4713_s15 = smov 8   ;;  %s4714_s16 = smov 128  }
  0x40   : > { %s4715_s11 = sld [smem:[#allocation25_spill]]  ;;  %s38_s30 = ssub.s32 %s3758_s24, %s3946_s26 }
  0x41   : > { %s41_s17 = sadd.s32 1, %s3754_s23  ;;  %p39_p12 = scmp.eq.s32.totalorder %s38_s30, 0 }
  0x42   : > { %p48_p13 = scmp.ne.s32.totalorder %s3754_s23, %s3750_s22  ;;  %p49_p0 = scmp.eq.s32.totalorder %s3758_s24, 0 }
  0x43   : > { %p3317_p5 = scmp.lt.s32.totalorder %s3758_s24, 2  ;;  %s494_s0 = sand.u32 1, %s3754_s23  }
  0x44   : > { %s3967_s20 = scalar_select %p39_p12, %s3754_s23, %s41_s17  }
  0x45   : > { %p50_p10 = por %p49_p0, %p48_p13  ;;  %p3971_p3 = por %p393_p2, %p48_p13 }
  0x46   : > { %3305 = dma.hbm_to_vmem [thread:$0]  (!%p3920_p11), %s4715_s11, 1024, %s469_s18, [#allocation9], %s4714_s16, %s4714_s16, %s4713_s15  }
  0x47   : > { %4716 = sst [smem:[#allocation20_spill]] %s3967_s20  ;;  %s3277_s21 = smul.u32 384, %s3758_s24 }
  0x48   : > { %s4717_s28 = scalar_select %p3971_p3, 1, 0 }
  0x49   : > { %s3276_s19 = smul.u32 24, %s494_s0  ;;  %p3977_p7 = pnand %p3317_p5, %p50_p10 }
  0x4a   : > { %4718 = sst [smem:[#allocation21_spill]] %s4717_s28  ;;  %s3988_s23 = scalar_lea.sflag [#allocation3], %s494_s0 }
  0x4b   : > { %s4720_s6 = sld [smem:[#allocation22_spill]]  ;;  %s498_s17 = scalar_lea.vmem [#allocation2], %s3276_s19 }
  0x4c   : > { %s505_s20 = sshll.u32 %s498_s17, 4  ;;  %p3660_p11 = pneg %p3977_p7  ;;  %s3986_s20 = int_to_ptr.vmem [resolvable:$true] %s505_s20 }
  0x51   : > { %s3984_s11 = scalar_lea.hbm %s4720_s6, %s3277_s21  ;;  %s3663_s21 = scalar_lea.hbm %s4720_s6, 768 }
  0x52   : > { %s3658_s26 = scalar_lea.hbm %s3984_s11, 384  ;;  %p3664_p13 = scmp.lt.s32.totalorder %s3984_s11, %s4720_s6 }
  0x53   : > { %p3659_p2 = scmp.ne.s32.totalorder %s3984_s11, %s3658_s26  ;;  %p3665_p0 = scmp.lt.s32.totalorder %s3663_s21, %s3658_s26 }
  0x55   : > { %p3661_p9 = pnand %p3660_p11, %p3659_p2  ;;  %p3666_p5 = por %p3665_p0, %p3664_p13 }
  0x57   : > { %p3662_p12 = pneg %p3661_p9 }
  0x59   : > { %p3667_p10 = pnand %p3666_p5, %p3662_p12 }
  0x5b   : > { %3670 = shalt.err (!%p3667_p10)
}
  0x5c   : > { %s3671_s0 = scalar_lea.vmem %s3986_s20, 384  ;;  %s3767_s19 = smov [#allocation2]  }
  0x5d   : > { %p3672_p1 = scmp.ne.s32.totalorder %s3986_s20, %s3671_s0  ;;  %s3676_s17 = sshll.u32 %s3767_s19, 4  ;;  %s3677_s17 = int_to_ptr.vmem [resolvable:$false] %s3676_s17 }
  0x5e   : > { %s3678_s24 = scalar_lea.vmem %s3677_s17, 768  ;;  %p3679_p9 = scmp.lt.s32.totalorder %s3986_s20, %s3677_s17 }
  0x5f   : > { %p3674_p6 = pnand %p3672_p1, %p3660_p11  ;;  %p3680_p3 = scmp.lt.s32.totalorder %s3678_s24, %s3671_s0 }
  0x61   : > { %p3675_p2 = pneg %p3674_p6  ;;  %p3681_p4 = por %p3680_p3, %p3679_p9 }
  0x63   : > { %p3682_p8 = pnand %p3681_p4, %p3675_p2 }
  0x65   : > { %3685 = shalt.err (!%p3682_p8)
}
  0x66   : > { %3309 = dma.hbm_to_vmem [thread:$0]  (!%p3977_p7), %s3984_s11, 384, %s3986_s20, %s3988_s23, %s4714_s16, %s4714_s16, %s4713_s15  }
  0x67   : > { %p4721_p1 = scmp.ne.s32.totalorder %s4708_s29, 0 }
  0x68   : > { %s4015_s26 = sand.u32 (!%p4721_p1), 1, %s3750_s22   ;;  %p4722_p4 = scmp.ne.s32.totalorder (!%p4721_p1), %s4705_s27, 0 }
  0x69   : > { %517 = sbr.rel (%p4721_p1) target bundleno = 5309 (0x14bd), region = 84  ;;  %s520_s18 = scalar_lea.sflag (!%p4721_p1), [#allocation3], %s4015_s26 }
  0x6a   : > { %s3278_s28 = smul.u32 (!%p4721_p1), 24, %s4015_s26 }
  0x6c   : > { %s4021_s3 = scalar_lea.vmem (!%p4721_p1), [#allocation2], %s3278_s28 }
  0x6e   : > { %3729 = dma.done.wait (%p4722_p4), %s520_s18, 384  }
  0x6f   : > { %3731 = vsyncadd (%p4722_p4), %s520_s18, 4294966912  ;;  %p4723_p6 = scmp.eq.s32.totalorder %s3892_s25, 0 }
  0x71   : > { %3733 = dma.done.wait (%p4723_p6), [#allocation6], 1536   ;;  %p4724_p8 = pmov %p4723_p6 }
  0x72   : > { %p4725_p3 = pmov %p4723_p6 }
  0x73   : > { %3735 = vsyncadd (%p4724_p8), [#allocation6], 4294965760 }
  0x74   : > { %3737 = dma.done.wait (%p4725_p3), [#allocation9], 1024   ;;  %p4726_p7 = pmov %p4725_p3 }
  0x75   : > { %vm588_vm0 = vcmask 523264   ;;  %v585_v0 = vld [vmem:[%s4021_s3] sm:$0xff]  ;;  %v587_v1 = vld [vmem:[%s4021_s3 + $0x10] sm:$0xff]  ;;  %v586_v2 = vld [vmem:[%s4021_s3 + $0x8] sm:$0xff]  ;;  %v3768_v25 = vmov 0   ;;  %v661_v55 = vlaneseq  ;;  %vm786_vm1 = vcmask 64512  }
  0x76   : > { %3739 = vsyncadd (%p4726_p7), [#allocation9], 4294966272  ;;  %v589_v3 = vsel %vm588_vm0, %v585_v0, 0.0  ;;  %v595_v4 = vsel %vm588_vm0, %v587_v1, 0.0  ;;  %v592_v5 = vsel %vm588_vm0, %v586_v2, 0.0  ;;  %749 = vmatprep.mubr.bf16.mxu1 %v3768_v25  ;;  %s3769_s20 = smov 56  }
  0x77   : > { %590 = vadd.xlane.f32.xlu0 %v589_v3  ;;  %596 = vadd.xlane.f32.xlu1 %v595_v4  ;;  %v3413_v21 = vld [vmem:[#allocation5 + $0x34] ss:$8 sps:$4 sm:$0xff]   ;;  %v3415_v22 = vld [vmem:[#allocation5 + $0x30] ss:$8 sps:$4 sm:$0xff]   ;;  %v3416_v23 = vld [vmem:[#allocation5 + $0x24] ss:$8 sps:$4 sm:$0xff]  }
  0x78   : > { %725 = vmatprep.subr.bf16.mxu1 %v3413_v21  ;;  %v3418_v24 = vld [vmem:[#allocation5 + $0x20] ss:$8 sps:$4 sm:$0xff]   ;;  %v3419_v26 = vld [vmem:[#allocation5 + $0x14] ss:$8 sps:$4 sm:$0xff]   ;;  %v3421_v27 = vld [vmem:[#allocation5 + $0x10] ss:$8 sps:$4 sm:$0xff]  }
  0x79   : > { %726 = vmatpush1.bf16.msra.mxu1 %v3415_v22  ;;  %v3422_v28 = vld [vmem:[#allocation5 + $0x4] ss:$8 sps:$4 sm:$0xff]   ;;  %v3424_v29 = vld [vmem:[#allocation5] ss:$8 sps:$4 sm:$0xff]   ;;  %v2908_v41 = vld [vmem:[%s4662_s1] ss:$0 sm:$0xff] }
  0x7a   : > { %727 = vmatprep.subr.bf16.mxu1 %v3416_v23  ;;  %v2909_v46 = vld [vmem:[%s4663_s2] ss:$0 sm:$0xff]  ;;  %v4054_v56 = vshrl.u32 %v661_v55, 7  ;;  %s3770_s21 = smov 64   ;;  %s3771_s30 = smov 120   ;;  %vm889_vm2 = vcmask 1043456  }
  0x7b   : > { %593 = vadd.xlane.f32.xlu0 %v592_v5  ;;  %v659_v58 = vld [vmem:[%s4665_s4] sm:$0x3]  ;;  %s3772_s0 = smov 48   ;;  %s3773_s19 = smov 112   ;;  %vm847_vm3 = vcmask 195584   ;;  %vm2215_vm4 = vcmask 130048  }
  0x7c   : > { %v663_v57 = vsub.s32 0, %v4054_v56  ;;  %v667_v60 = vsub.s32 1, %v4054_v56  ;;  %s3775_s16 = smov 104   ;;  %s3776_s23 = smov 32   ;;  %vm2222_vm5 = vcmask 261120   ;;  %vm2226_vm6 = vcmask 326656  }
  0x7d   : > { %728 = vmatpush1.bf16.msra.mxu1 %v3418_v24  ;;  %s3777_s27 = smov 96   ;;  %s3778_s24 = smov 24   ;;  %vm2230_vm7 = vcmask 392192   ;;  %vm2234_vm8 = vcmask 457728  }
  0x7e   : > { %729 = vmatprep.subr.bf16.mxu1 %v3419_v26  ;;  %v664_v59 = vrot.slane %v659_v58, %v663_v57  ;;  %s3779_s18 = smov 88   ;;  %s3781_s17 = smov 80  }
  0x7f   : > { %s4729_s29 = sld [smem:[#allocation27_spill]] }
  0x81   : > { %730 = vmatpush1.bf16.msra.mxu1 %v3421_v27 }
  0x82   : > { %731 = vmatprep.subr.bf16.mxu1 %v3422_v28 }
  0x85   : > { %732 = vmatpush1.bf16.msra.mxu1 %v3424_v29 }
 0x100   : > { %v591_v6 = vpop.xlane.xlu0 %590  ;;  %v597_v7 = vpop.xlane.xlu1 %596 }
 0x101   : > { %v599_v8 = vmul.f32 0.015625, %v591_v6  ;;  %v601_v9 = vmul.f32 0.015625, %v597_v7 }
 0x103   : > { %v602_v10 = vsub.f32 %v585_v0, %v599_v8  ;;  %v604_v11 = vsub.f32 %v587_v1, %v601_v9  ;;  %v668_v0 = vrot.slane %v659_v58, %v667_v60 }
 0x104   : > { %v594_v12 = vpop.xlane.xlu0 %593 }
 0x105   : > { %v600_v13 = vmul.f32 0.015625, %v594_v12  ;;  %v605_v14 = vmul.f32 %v602_v10, %v602_v10  ;;  %v607_v15 = vmul.f32 %v604_v11, %v604_v11 }
 0x107   : > { %v603_v16 = vsub.f32 %v586_v2, %v600_v13  ;;  %v608_v17 = vsel %vm588_vm0, %v605_v14, 0.0  ;;  %v614_v18 = vsel %vm588_vm0, %v607_v15, 0.0 }
 0x108   : > { %609 = vadd.xlane.f32.xlu1 %v608_v17 }
 0x109   : > { %v606_v19 = vmul.f32 %v603_v16, %v603_v16 }
 0x10b   : > { %v611_v20 = vsel %vm588_vm0, %v606_v19, 0.0 }
 0x10c   : > { %615 = vadd.xlane.f32.xlu1 %v614_v18  ;;  %612 = vadd.xlane.f32.xlu0 %v611_v20 }
 0x191   : > { %v610_v30 = vpop.xlane.xlu1 %609 }
 0x192   : > { %v617_v31 = vmul.f32 0.015625, %v610_v30 }
 0x194   : > { %v620_v32 = vadd.f32 1e-05, %v617_v31 }
 0x195   : > { %v616_v33 = vpop.xlane.xlu1 %615  ;;  %v613_v34 = vpop.xlane.xlu0 %612 }
 0x196   : > { %3457 = vrsqrt.f32 %v620_v32  ;;  %v619_v35 = vmul.f32 0.015625, %v616_v33  ;;  %v618_v36 = vmul.f32 0.015625, %v613_v34 }
 0x198   : > { %v622_v37 = vadd.f32 1e-05, %v619_v35  ;;  %v621_v38 = vadd.f32 1e-05, %v618_v36 }
 0x19a   : > { %3459 = vrsqrt.f32 %v622_v37 }
 0x19b   : > { %3461 = vrsqrt.f32 %v621_v38 }
 0x1a3   : > { %v3458_v39 = vpop.eup %3457 }
 0x1a4   : > { %v626_v40 = vmul.f32 %v3458_v39, %v602_v10 }
 0x1a6   : > { %v636_v45 = vmul.f32 %v2908_v41, %v626_v40 }
 0x1a7   : > { %v3460_v42 = vpop.eup %3459 }
 0x1a8   : > { %v3462_v43 = vpop.eup %3461  ;;  %v628_v48 = vmul.f32 %v3460_v42, %v604_v11  ;;  %v646_v49 = vadd.f32 %v2909_v46, %v636_v45  ;;  %v779_v42 = vld [vmem:[%s4666_s5 + $0x10] sm:$0xff] }
 0x1a9   : > { %v627_v44 = vmul.f32 %v3462_v43, %v603_v16 }
 0x1aa   : > { %v638_v52 = vmul.f32 %v2908_v41, %v628_v48  ;;  %v778_v48 = vld [vmem:[%s4666_s5 + $0x8] sm:$0xff] }
 0x1ab   : > { %v637_v47 = vmul.f32 %v2908_v41, %v627_v44  ;;  %v777_v41 = vld [vmem:[%s4666_s5] sm:$0xff] }
 0x1ac   : > { %v648_v53 = vadd.f32 %v2909_v46, %v638_v52  ;;  %v2924_v52 = vld [vmem:[%s4666_s5 + $0x18] sm:$0xff] }
 0x1ad   : > { %v647_v50 = vadd.f32 %v2909_v46, %v637_v47 }
 0x1ae   : > { %v650_v54 = vpack.c.bf16 %v648_v53, %v648_v53 }
 0x1af   : > { %v649_v51 = vpack.c.bf16 %v647_v50, %v646_v49 }
 0x1b1   : > { %2918 = vmatmul.mubr.msk.bf16.vlgmr.msra.gmra.mxu1 %vm588_vm0, %v649_v51  ;;  %v2926_v51 = vld [vmem:[%s4666_s5 + $0x28] sm:$0xff] }
 0x1b2   : > { %759 = vmatprep.mubr.bf16.mxu1 %v3768_v25 }
 0x1b9   : > { %2919 = vmatmul.mubr.msk.bf16.gmra.mxu1 %vm588_vm0, %v650_v54 }
 0x271   : > { %v751_v61 = vpop.f32.mrf.mxu1 }
 0x272   : > { %v752_v63 = vadd.f32 %v751_v61, %v664_v59 }
 0x273   : > { %v753_v62 = vpop.f32.mrf.mxu1 }
 0x274   : > { %v768_v4 = vmul.f32 0.35355338, %v752_v63  ;;  %v754_v5 = vadd.f32 %v753_v62, %v668_v0 }
 0x275   : > { %v755_v1 = vpop.f32.mrf.mxu1 }
 0x276   : > { %v756_v2 = vadd.f32 %v755_v1, %v664_v59 }
 0x277   : > { %v757_v3 = vpop.f32.mrf.mxu1 }
 0x278   : > { %v769_v6 = vmul.f32 0.35355338, %v756_v2  ;;  %v758_v7 = vadd.f32 %v757_v3, %v668_v0  ;;  %v4076_v16 = vpack.c.bf16 %v756_v2, %v752_v63  ;;  %v2925_v63 = vld [vmem:[%s4666_s5 + $0x20] sm:$0xff] }
 0x279   : > { %v761_v8 = vpop.f32.mrf.mxu1 }
 0x27a   : > { %v4065_v9 = vpack.c.bf16 %v769_v6, %v768_v4  ;;  %v4067_v10 = vpack.c.bf16 %v758_v7, %v754_v5  ;;  %v762_v11 = vadd.f32 %v761_v8, %v664_v59  ;;  %v2931_v4 = vld [vmem:[%s4666_s5 + $0x30] sm:$0xff]  ;;  %v2933_v6 = vld [vmem:[%s4666_s5 + $0x40] sm:$0xff] }
 0x27b   : > { %v763_v12 = vpop.f32.mrf.mxu1 }
 0x27c   : > { %v4069_v13 = vpack.c.bf16 %v762_v11, %v762_v11  ;;  %3116 = vmatprep.mubr.msk.bf16.mxu1 %vm786_vm1, %v4065_v9  ;;  %v770_v17 = vmul.f32 0.35355338, %v762_v11  ;;  %v764_v26 = vadd.f32 %v763_v12, %v668_v0  ;;  %v2932_v12 = vld [vmem:[%s4666_s5 + $0x38] sm:$0xff] }
 0x27d   : > { %v765_v14 = vpop.f32.mrf.mxu1 }
 0x27e   : > { %953 = vrot.lane.b32.xlu1 %v4069_v13, %s3769_s20  ;;  %784 = vrot.lane.b32.xlu0 %v4069_v13, %s3770_s21  ;;  %v4081_v18 = vpack.c.bf16 %v770_v17, %v770_v17  ;;  %v4101_v28 = vpack.c.bf16 %v764_v26, %v764_v26 }
 0x27f   : > { %v766_v15 = vpop.f32.mrf.mxu1 }
 0x280   : > { %v891_v33 = vsel %vm889_vm2, %v4101_v28, 0 }
 0x282   : > { %782 = vrot.lane.b32.xlu1 %v4076_v16, %s3770_s21  ;;  %947 = vrot.lane.b32.xlu0 %v4065_v9, %s3771_s30  ;;  %s3780_s21 = smov 16  }
 0x286   : > { %951 = vrot.lane.b32.xlu1 %v4076_v16, %s3769_s20  ;;  %949 = vrot.lane.b32.xlu0 %v4081_v18, %s3771_s30 }
 0x28a   : > { %1124 = vrot.lane.b32.xlu1 %v4069_v13, %s3772_s0  ;;  %1118 = vrot.lane.b32.xlu0 %v4065_v9, %s3773_s19 }
 0x28e   : > { %1122 = vrot.lane.b32.xlu1 %v4076_v16, %s3772_s0 }
 0x292   : > { %1120 = vrot.lane.b32.xlu1 %v4081_v18, %s3773_s19 }
 0x2f0   : > { %v954_v19 = vpop.permute.xlu1 %953  ;;  %v785_v20 = vpop.permute.xlu0 %784 }
 0x2f1   : > { %3252 = vmatprep.subr.msk.bf16.mxu1 %vm786_vm1, %v785_v20  ;;  %3255 = vmatprep.subr.msk.bf16.mxu0 %vm786_vm1, %v954_v19  ;;  %v797_v21 = vsel %vm786_vm1, %v785_v20, 0  ;;  %v965_v22 = vsel %vm786_vm1, %v954_v19, 0 }
 0x2f2   : > { %3113 = vmatpush3.bf16.xpose.msra.mxu1 %v797_v21  ;;  %3129 = vmatpush3.bf16.xpose.msra.mxu0 %v965_v22 }
 0x2f4   : > { %v783_v23 = vpop.permute.xlu1 %782  ;;  %v948_v24 = vpop.permute.xlu0 %947 }
 0x2f5   : > { %3253 = vmatprep.subr.msk.bf16.mxu1 %vm786_vm1, %v783_v23  ;;  %3132 = vmatprep.mubr.msk.bf16.mxu0 %vm786_vm1, %v948_v24  ;;  %v794_v29 = vsel %vm786_vm1, %v783_v23, 0 }
 0x2f8   : > { %v952_v27 = vpop.permute.xlu1 %951  ;;  %v950_v31 = vpop.permute.xlu0 %949 }
 0x2f9   : > { %3256 = vmatprep.subr.msk.bf16.mxu0 %vm786_vm1, %v952_v27  ;;  %v962_v30 = vsel %vm786_vm1, %v952_v27, 0 }
 0x2fa   : > { %3115 = vmatpush3.bf16.xpose.msra.mxu1 %v794_v29  ;;  %3131 = vmatpush3.bf16.xpose.msra.mxu0 %v962_v30 }
 0x2fb   : > { %3254 = vmatprep.subr.msk.bf16.mxu1 %vm889_vm2, %v4101_v28 }
 0x2fc   : > { %v1125_v32 = vpop.permute.xlu1 %1124  ;;  %v1119_v35 = vpop.permute.xlu0 %1118 }
 0x2fd   : > { %3258 = vmatprep.subr.msk.bf16.mxu0 %vm786_vm1, %v1125_v32  ;;  %v1136_v34 = vsel %vm786_vm1, %v1125_v32, 0 }
 0x300   : > { %v1123_v36 = vpop.permute.xlu1 %1122 }
 0x301   : > { %3117 = vmatmul.mubr.msk.bf16.vlgmr.msra.gmra.mxu1 %vm786_vm1, %v4081_v18  ;;  %3133 = vmatmul.mubr.msk.bf16.vlgmr.msra.gmra.mxu0 %vm786_vm1, %v950_v31  ;;  %v1133_v37 = vsel %vm786_vm1, %v1123_v36, 0 }
 0x302   : > { %3121 = vmatpush3.bf16.msra.mxu1 %v891_v33  ;;  %3145 = vmatpush3.bf16.xpose.msra.mxu0 %v1136_v34 }
 0x303   : > { %3148 = vmatprep.mubr.msk.bf16.mxu0 %vm786_vm1, %v1119_v35  ;;  %3122 = vmatprep.subr.bf16.mxu1 %v4067_v10 }
 0x304   : > { %3259 = vmatprep.subr.msk.bf16.mxu0 %vm786_vm1, %v1123_v36  ;;  %v1121_v38 = vpop.permute.xlu1 %1120 }
 0x306   : > { %3123 = vmatpush3.bf16.msra.mxu1 %v4067_v10 }
 0x30a   : > { %3147 = vmatpush3.bf16.xpose.msra.mxu0 %v1133_v37 }
 0x311   : > { %3149 = vmatmul.mubr.msk.bf16.vlgmr.msra.gmra.mxu0 %vm786_vm1, %v1121_v38 }
 0x3c1   : > { %v3118_v39 = vpop.f32.mrf.mxu1  ;;  %v3134_v40 = vpop.f32.mrf.mxu0 }
 0x3c2   : > { %v842_v49 = vadd.f32 %v3118_v39, %v779_v42  ;;  %v1010_v55 = vadd.f32 %v3134_v40, %v2926_v51 }
 0x3c3   : > { %v833_v43 = vpop.f32.mrf.mxu1  ;;  %v1001_v44 = vpop.f32.mrf.mxu0 }
 0x3c4   : > { %v834_v45 = vadd.f32 %v833_v43, %v777_v41  ;;  %v1002_v58 = vadd.f32 %v2924_v52, %v1001_v44  ;;  %v854_v61 = vsel %vm847_vm3, %v842_v49, -inf  ;;  %v1021_v1 = vsel %vm847_vm3, %v1010_v55, -inf }
 0x3c5   : > { %v3119_v46 = vpop.f32.mrf.mxu1  ;;  %v3135_v47 = vpop.f32.mrf.mxu0 }
 0x3c6   : > { %v848_v50 = vsel %vm847_vm3, %v834_v45, -inf  ;;  %v1015_v2 = vsel %vm847_vm3, %v1002_v58, -inf }
 0x3c7   : > { %v836_v53 = vpop.f32.mrf.mxu1  ;;  %849 = vmax.xlane.f32.xlu0 %v848_v50  ;;  %v1004_v62 = vpop.f32.mrf.mxu0 }
 0x3c8   : > { %v837_v54 = vadd.f32 %v836_v53, %v778_v48  ;;  %v4142_v0 = vadd.f32 %v2925_v63, %v1004_v62 }
 0x3ca   : > { %v851_v59 = vsel %vm847_vm3, %v837_v54, -inf  ;;  %v1018_v5 = vsel %vm847_vm3, %v4142_v0, -inf }
 0x3cb   : > { %852 = vmax.xlane.f32.xlu1 %v851_v59  ;;  %855 = vmax.xlane.f32.xlu0 %v854_v61 }
 0x3cf   : > { %1022 = vmax.xlane.f32.xlu1 %v1021_v1  ;;  %1016 = vmax.xlane.f32.xlu0 %v1015_v2 }
 0x3d1   : > { %v3150_v3 = vpop.f32.mrf.mxu0 }
 0x3d2   : > { %v1181_v14 = vadd.f32 %v3150_v3, %v2933_v6 }
 0x3d3   : > { %v1172_v7 = vpop.f32.mrf.mxu0  ;;  %1019 = vmax.xlane.f32.xlu0 %v1018_v5 }
 0x3d4   : > { %v4154_v8 = vadd.f32 %v2931_v4, %v1172_v7  ;;  %v1192_v21 = vsel %vm847_vm3, %v1181_v14, -inf }
 0x3d5   : > { %v3151_v11 = vpop.f32.mrf.mxu0 }
 0x3d6   : > { %v1186_v15 = vsel %vm847_vm3, %v4154_v8, -inf }
 0x3d7   : > { %v1175_v17 = vpop.f32.mrf.mxu0  ;;  %1187 = vmax.xlane.f32.xlu0 %v1186_v15 }
 0x3d8   : > { %v1176_v19 = vadd.f32 %v2932_v12, %v1175_v17 }
 0x3da   : > { %v1189_v20 = vsel %vm847_vm3, %v1176_v19, -inf }
 0x3db   : > { %1190 = vmax.xlane.f32.xlu1 %v1189_v20  ;;  %1193 = vmax.xlane.f32.xlu0 %v1192_v21 }
 0x450   : > { %v850_v22 = vpop.xlane.xlu0 %849 }
 0x451   : > { %v857_v23 = vsub.f32 %v834_v45, %v850_v22 }
 0x453   : > { %v860_v30 = vmul.f32 1.442695, %v857_v23 }
 0x454   : > { %v853_v24 = vpop.xlane.xlu1 %852  ;;  %v856_v26 = vpop.xlane.xlu0 %855 }
 0x455   : > { %v859_v27 = vsub.f32 %v842_v49, %v856_v26  ;;  %v858_v35 = vsub.f32 %v837_v54, %v853_v24 }
 0x457   : > { %v864_v29 = vmul.f32 1.442695, %v859_v27  ;;  %v862_v38 = vmul.f32 1.442695, %v858_v35 }
 0x458   : > { %v1023_v31 = vpop.xlane.xlu1 %1022  ;;  %v1017_v32 = vpop.xlane.xlu0 %1016 }
 0x459   : > { %v1026_v33 = vsub.f32 %v1010_v55, %v1023_v31  ;;  %v1024_v34 = vsub.f32 %v1002_v58, %v1017_v32  ;;  %3463 = vpow2.f32 %v864_v29 }
 0x45a   : > { %3465 = vpow2.f32 %v860_v30 }
 0x45b   : > { %v1031_v36 = vmul.f32 1.442695, %v1026_v33  ;;  %v1027_v37 = vmul.f32 1.442695, %v1024_v34 }
 0x45c   : > { %v1020_v49 = vpop.xlane.xlu0 %1019 }
 0x45d   : > { %3467 = vpow2.f32 %v1031_v36  ;;  %v1025_v51 = vsub.f32 %v4142_v0, %v1020_v49 }
 0x45e   : > { %3469 = vpow2.f32 %v1027_v37 }
 0x45f   : > { %3471 = vpow2.f32 %v862_v38  ;;  %v1029_v55 = vmul.f32 1.442695, %v1025_v51 }
 0x460   : > { %v1188_v50 = vpop.xlane.xlu0 %1187 }
 0x461   : > { %3473 = vpow2.f32 %v1029_v55  ;;  %v1195_v61 = vsub.f32 %v4154_v8, %v1188_v50 }
 0x463   : > { %v1198_v63 = vmul.f32 1.442695, %v1195_v61 }
 0x464   : > { %v1191_v52 = vpop.xlane.xlu1 %1190  ;;  %v1194_v53 = vpop.xlane.xlu0 %1193 }
 0x465   : > { %v1196_v54 = vsub.f32 %v1176_v19, %v1191_v52  ;;  %v1197_v58 = vsub.f32 %v1181_v14, %v1194_v53 }
 0x466   : > { %v4163_v39 = vpop.eup %3463 }
 0x467   : > { %v872_v40 = vsel %vm847_vm3, %v4163_v39, 0.0  ;;  %v4167_v41 = vpop.eup %3465  ;;  %v1200_v59 = vmul.f32 1.442695, %v1196_v54  ;;  %v1202_v62 = vmul.f32 1.442695, %v1197_v58 }
 0x468   : > { %873 = vadd.xlane.f32.xlu1 %v872_v40  ;;  %v866_v45 = vsel %vm847_vm3, %v4167_v41, 0.0 }
 0x469   : > { %3475 = vpow2.f32 %v1200_v59 }
 0x46a   : > { %v4169_v42 = vpop.eup %3467  ;;  %3477 = vpow2.f32 %v1202_v62 }
 0x46b   : > { %v1039_v43 = vsel %vm847_vm3, %v4169_v42, 0.0  ;;  %v4173_v44 = vpop.eup %3469  ;;  %3479 = vpow2.f32 %v1198_v63 }
 0x46c   : > { %1040 = vadd.xlane.f32.xlu0 %v1039_v43  ;;  %867 = vadd.xlane.f32.xlu1 %v866_v45  ;;  %v1033_v46 = vsel %vm847_vm3, %v4173_v44, 0.0  ;;  %v3472_v47 = vpop.eup %3471 }
 0x46d   : > { %v869_v48 = vsel %vm847_vm3, %v3472_v47, 0.0 }
 0x46e   : > { %v3474_v1 = vpop.eup %3473 }
 0x46f   : > { %v1036_v3 = vsel %vm847_vm3, %v3474_v1, 0.0 }
 0x470   : > { %1034 = vadd.xlane.f32.xlu0 %v1033_v46 }
 0x474   : > { %870 = vadd.xlane.f32.xlu0 %v869_v48 }
 0x476   : > { %v4188_v2 = vpop.eup %3475 }
 0x477   : > { %v4191_v0 = vpop.eup %3477  ;;  %v1207_v4 = vsel %vm847_vm3, %v4188_v2, 0.0 }
 0x478   : > { %v1210_v5 = vsel %vm847_vm3, %v4191_v0, 0.0  ;;  %v4197_v6 = vpop.eup %3479 }
 0x479   : > { %v1204_v7 = vsel %vm847_vm3, %v4197_v6, 0.0 }
 0x47d   : > { %1052 = vrot.lane.b32.xlu1 %v4067_v10, %s3771_s30 }
 0x481   : > { %1223 = vrot.lane.b32.xlu1 %v4101_v28, %s3773_s19 }
 0x48a   : > { %1054 = vrot.lane.b32.xlu0 %v4101_v28, %s3771_s30  ;;  %s3774_s30 = smov 40  }
 0x4a5   : > { %1037 = vadd.xlane.f32.xlu1 %v1036_v3 }
 0x4a9   : > { %1208 = vadd.xlane.f32.xlu0 %v1207_v4  ;;  %1211 = vadd.xlane.f32.xlu1 %v1210_v5 }
 0x4ad   : > { %1205 = vadd.xlane.f32.xlu1 %v1204_v7 }
 0x4be   : > { %1221 = vrot.lane.b32.xlu1 %v4067_v10, %s3773_s19  ;;  %s3782_s19 = smov 8  }
 0x4bf   : > { %1293 = vrot.lane.b32.xlu0 %v4069_v13, %s3774_s30 }
 0x4c2   : > { %1291 = vrot.lane.b32.xlu1 %v4076_v16, %s3774_s30 }
 0x4c3   : > { %1287 = vrot.lane.b32.xlu0 %v4065_v9, %s3775_s16 }
 0x4c6   : > { %1289 = vrot.lane.b32.xlu1 %v4081_v18, %s3775_s16 }
 0x4f1   : > { %v874_v8 = vpop.xlane.xlu1 %873 }
 0x4f2   : > { %3481 = vrcp.f32 %v874_v8 }
 0x4f5   : > { %v1041_v11 = vpop.xlane.xlu0 %1040  ;;  %v868_v12 = vpop.xlane.xlu1 %867 }
 0x4f6   : > { %3483 = vrcp.f32 %v868_v12 }
 0x4f9   : > { %v1035_v14 = vpop.xlane.xlu0 %1034  ;;  %v1053_v29 = vpop.permute.xlu1 %1052 }
 0x4fd   : > { %v871_v15 = vpop.xlane.xlu0 %870  ;;  %v1224_v31 = vpop.permute.xlu1 %1223 }
 0x4fe   : > { %3485 = vrcp.f32 %v871_v15  ;;  %v1233_v48 = vsel %vm889_vm2, %v1224_v31, 0 }
 0x4ff   : > { %v3482_v19 = vpop.eup %3481  ;;  %3487 = vrcp.f32 %v1041_v11 }
 0x500   : > { %v880_v22 = vmul.f32 %v3482_v19, %v4163_v39  ;;  %3489 = vrcp.f32 %v1035_v14  ;;  %v2938_v19 = vld [vmem:[%s4666_s5 + $0x48] sm:$0xff] }
 0x501   : > { %v1055_v17 = vpop.permute.xlu0 %1054 }
 0x502   : > { %3257 = vmatprep.subr.msk.bf16.mxu1 %vm889_vm2, %v1055_v17  ;;  %v882_v27 = vpack.c.bf16 %v880_v22, %v880_v22  ;;  %v1064_v30 = vsel %vm889_vm2, %v1055_v17, 0 }
 0x503   : > { %v3484_v20 = vpop.eup %3483 }
 0x504   : > { %v878_v23 = vmul.f32 %v3484_v20, %v4167_v41  ;;  %v2940_v20 = vld [vmem:[%s4666_s5 + $0x58] sm:$0xff] }
 0x50b   : > { %v3486_v21 = vpop.eup %3485 }
 0x50c   : > { %v879_v24 = vmul.f32 %v3486_v21, %v3472_v47  ;;  %v3488_v36 = vpop.eup %3487 }
 0x50d   : > { %v3490_v37 = vpop.eup %3489  ;;  %v1047_v39 = vmul.f32 %v3488_v36, %v4169_v42 }
 0x50e   : > { %v881_v26 = vpack.c.bf16 %v879_v24, %v878_v23  ;;  %v1045_v40 = vmul.f32 %v3490_v37, %v4173_v44  ;;  %v2939_v24 = vld [vmem:[%s4666_s5 + $0x50] sm:$0xff] }
 0x50f   : > { %v1049_v45 = vpack.c.bf16 %v1047_v39, %v1047_v39 }
 0x510   : > { %3124 = vmatprep.mubr.msk.bf16.mxu1 %vm847_vm3, %v881_v26 }
 0x511   : > { %3125 = vmatmul.mubr.msk.bf16.vlgmr.msra.gmra.mxu1 %vm847_vm3, %v882_v27 }
 0x512   : > { %3137 = vmatpush3.bf16.msra.mxu1 %v1064_v30 }
 0x513   : > { %3138 = vmatprep.subr.bf16.mxu1 %v1053_v29 }
 0x516   : > { %3139 = vmatpush3.bf16.msra.mxu1 %v1053_v29 }
 0x517   : > { %3260 = vmatprep.subr.msk.bf16.mxu1 %vm889_vm2, %v1224_v31 }
 0x52e   : > { %v1038_v32 = vpop.xlane.xlu1 %1037 }
 0x52f   : > { %3491 = vrcp.f32 %v1038_v32 }
 0x532   : > { %v1212_v33 = vpop.xlane.xlu1 %1211  ;;  %v1209_v34 = vpop.xlane.xlu0 %1208 }
 0x533   : > { %3493 = vrcp.f32 %v1212_v33 }
 0x534   : > { %3495 = vrcp.f32 %v1209_v34 }
 0x536   : > { %v1206_v35 = vpop.xlane.xlu1 %1205  ;;  %v1294_v51 = vpop.permute.xlu0 %1293 }
 0x537   : > { %3497 = vrcp.f32 %v1206_v35  ;;  %v1305_v55 = vsel %vm786_vm1, %v1294_v51, 0 }
 0x53a   : > { %v1222_v49 = vpop.permute.xlu1 %1221  ;;  %v1288_v58 = vpop.permute.xlu0 %1287 }
 0x53c   : > { %v3492_v38 = vpop.eup %3491 }
 0x53d   : > { %v1046_v41 = vmul.f32 %v3492_v38, %v3474_v1 }
 0x53e   : > { %v1292_v59 = vpop.permute.xlu1 %1291 }
 0x53f   : > { %v1048_v43 = vpack.c.bf16 %v1046_v41, %v1045_v40  ;;  %v1302_v61 = vsel %vm786_vm1, %v1292_v59, 0 }
 0x540   : > { %v3494_v46 = vpop.eup %3493 }
 0x541   : > { %3140 = vmatprep.mubr.msk.bf16.mxu1 %vm847_vm3, %v1048_v43  ;;  %v3496_v47 = vpop.eup %3495  ;;  %v1218_v42 = vmul.f32 %v3494_v46, %v4191_v0 }
 0x542   : > { %3141 = vmatmul.mubr.msk.bf16.vlgmr.msra.gmra.mxu1 %vm847_vm3, %v1049_v45  ;;  %v1217_v52 = vmul.f32 %v3496_v47, %v4188_v2  ;;  %v1290_v62 = vpop.permute.xlu1 %1289 }
 0x543   : > { %3153 = vmatpush3.bf16.msra.mxu1 %v1233_v48  ;;  %v1220_v54 = vpack.c.bf16 %v1218_v42, %v1218_v42 }
 0x544   : > { %v3498_v50 = vpop.eup %3497  ;;  %3154 = vmatprep.subr.bf16.mxu1 %v1222_v49 }
 0x545   : > { %v1216_v44 = vmul.f32 %v3498_v50, %v4197_v6 }
 0x547   : > { %3155 = vmatpush3.bf16.msra.mxu1 %v1222_v49  ;;  %v1219_v53 = vpack.c.bf16 %v1217_v52, %v1216_v44 }
 0x548   : > { %3261 = vmatprep.subr.msk.bf16.mxu1 %vm786_vm1, %v1294_v51 }
 0x549   : > { %3156 = vmatprep.mubr.msk.bf16.mxu1 %vm847_vm3, %v1219_v53 }
 0x54a   : > { %3157 = vmatmul.mubr.msk.bf16.vlgmr.msra.gmra.mxu1 %vm847_vm3, %v1220_v54 }
 0x54b   : > { %3161 = vmatpush3.bf16.xpose.msra.mxu1 %v1305_v55  ;;  %3164 = vmatprep.mubr.msk.bf16.mxu1 %vm786_vm1, %v1288_v58 }
 0x54c   : > { %3262 = vmatprep.subr.msk.bf16.mxu1 %vm786_vm1, %v1292_v59 }
 0x553   : > { %3163 = vmatpush3.bf16.xpose.msra.mxu1 %v1302_v61 }
 0x55a   : > { %3165 = vmatmul.mubr.msk.bf16.vlgmr.msra.gmra.mxu1 %vm786_vm1, %v1290_v62 }
 0x5d1   : > { %v4234_v63 = vpop.f32.mrf.mxu1 }
 0x5d3   : > { %v4236_v1 = vpop.f32.mrf.mxu1 }
 0x5d5   : > { %v3127_v2 = vpop.f32.mrf.mxu1 }
 0x5d7   : > { %v4238_v3 = vpop.f32.mrf.mxu1 }
 0x602   : > { %v4240_v0 = vpop.f32.mrf.mxu1 }
 0x604   : > { %v4242_v4 = vpop.f32.mrf.mxu1 }
 0x606   : > { %v3143_v5 = vpop.f32.mrf.mxu1 }
 0x608   : > { %v4244_v6 = vpop.f32.mrf.mxu1 }
 0x609   : > { %v3378_v7 = vpack.i.bf16 %v4244_v6, %v4242_v4 }
 0x60a   : > { %v4248_v8 = vpop.f32.mrf.mxu1 }
 0x60c   : > { %v4250_v11 = vpop.f32.mrf.mxu1 }
 0x60e   : > { %v3159_v12 = vpop.f32.mrf.mxu1 }
 0x610   : > { %v4252_v14 = vpop.f32.mrf.mxu1 }
 0x611   : > { %v3383_v15 = vpack.i.bf16 %v4252_v14, %v4250_v11 }
 0x61a   : > { %v3166_v17 = vpop.f32.mrf.mxu1 }
 0x61b   : > { %v1350_v26 = vadd.f32 %v3166_v17, %v2940_v20 }
 0x61c   : > { %v1341_v21 = vpop.f32.mrf.mxu1 }
 0x61d   : > { %v1342_v22 = vadd.f32 %v2938_v19, %v1341_v21  ;;  %v1361_v32 = vsel %vm847_vm3, %v1350_v26, -inf }
 0x61e   : > { %v3167_v23 = vpop.f32.mrf.mxu1 }
 0x61f   : > { %v1355_v27 = vsel %vm847_vm3, %v1342_v22, -inf }
 0x620   : > { %v1344_v29 = vpop.f32.mrf.mxu1  ;;  %1356 = vmax.xlane.f32.xlu0 %v1355_v27 }
 0x621   : > { %v1345_v30 = vadd.f32 %v2939_v24, %v1344_v29 }
 0x623   : > { %v1358_v31 = vsel %vm847_vm3, %v1345_v30, -inf }
 0x624   : > { %1359 = vmax.xlane.f32.xlu1 %v1358_v31  ;;  %1362 = vmax.xlane.f32.xlu0 %v1361_v32  ;;  %v2945_v31 = vld [vmem:[%s4666_s5 + $0x60] sm:$0xff]  ;;  %v2947_v32 = vld [vmem:[%s4666_s5 + $0x70] sm:$0xff] }
 0x6a9   : > { %v1357_v33 = vpop.xlane.xlu0 %1356 }
 0x6aa   : > { %v1364_v34 = vsub.f32 %v1342_v22, %v1357_v33 }
 0x6ac   : > { %v1367_v35 = vmul.f32 1.442695, %v1364_v34 }
 0x6ad   : > { %v1360_v36 = vpop.xlane.xlu1 %1359  ;;  %v1363_v37 = vpop.xlane.xlu0 %1362 }
 0x6ae   : > { %3499 = vpow2.f32 %v1367_v35  ;;  %v1365_v38 = vsub.f32 %v1345_v30, %v1360_v36  ;;  %v1366_v39 = vsub.f32 %v1350_v26, %v1363_v37  ;;  %v2946_v36 = vld [vmem:[%s4666_s5 + $0x68] sm:$0xff] }
 0x6b0   : > { %v1369_v40 = vmul.f32 1.442695, %v1365_v38  ;;  %v1371_v41 = vmul.f32 1.442695, %v1366_v39 }
 0x6b2   : > { %3501 = vpow2.f32 %v1369_v40 }
 0x6b3   : > { %3503 = vpow2.f32 %v1371_v41 }
 0x6bb   : > { %v3500_v43 = vpop.eup %3499 }
 0x6bc   : > { %v1373_v45 = vsel %vm847_vm3, %v3500_v43, 0.0 }
 0x6bd   : > { %1374 = vadd.xlane.f32.xlu0 %v1373_v45 }
 0x6bf   : > { %v3502_v46 = vpop.eup %3501 }
 0x6c0   : > { %v3504_v47 = vpop.eup %3503  ;;  %v1376_v48 = vsel %vm847_vm3, %v3502_v46, 0.0 }
 0x6c1   : > { %1377 = vadd.xlane.f32.xlu0 %v1376_v48  ;;  %v1379_v49 = vsel %vm847_vm3, %v3504_v47, 0.0 }
 0x6c2   : > { %1380 = vadd.xlane.f32.xlu1 %v1379_v49 }
 0x6d3   : > { %1390 = vrot.lane.b32.xlu1 %v4067_v10, %s3775_s16 }
 0x6d7   : > { %1462 = vrot.lane.b32.xlu1 %v4069_v13, %s3776_s23  ;;  %1392 = vrot.lane.b32.xlu0 %v4101_v28, %s3775_s16  ;;  %s3784_s16 = smov [#allocation10]  }
 0x6db   : > { %1460 = vrot.lane.b32.xlu1 %v4076_v16, %s3776_s23  ;;  %1456 = vrot.lane.b32.xlu0 %v4065_v9, %s3777_s27 }
 0x6df   : > { %1458 = vrot.lane.b32.xlu1 %v4081_v18, %s3777_s27 }
 0x746   : > { %v1375_v50 = vpop.xlane.xlu0 %1374 }
 0x747   : > { %3505 = vrcp.f32 %v1375_v50 }
 0x74a   : > { %v1378_v51 = vpop.xlane.xlu0 %1377 }
 0x74b   : > { %v1381_v42 = vpop.xlane.xlu1 %1380  ;;  %3507 = vrcp.f32 %v1378_v51 }
 0x74c   : > { %3509 = vrcp.f32 %v1381_v42 }
 0x74e   : > { %v1393_v44 = vpop.permute.xlu0 %1392 }
 0x74f   : > { %v1391_v52 = vpop.permute.xlu1 %1390  ;;  %v1402_v53 = vsel %vm889_vm2, %v1393_v44, 0  ;;  %3263 = vmatprep.subr.msk.bf16.mxu0 %vm889_vm2, %v1393_v44 }
 0x750   : > { %3169 = vmatpush3.bf16.msra.mxu0 %v1402_v53 }
 0x751   : > { %3170 = vmatprep.subr.bf16.mxu0 %v1391_v52 }
 0x752   : > { %v1457_v19 = vpop.permute.xlu0 %1456 }
 0x753   : > { %v1463_v54 = vpop.permute.xlu1 %1462 }
 0x754   : > { %3171 = vmatpush3.bf16.msra.mxu0 %v1391_v52  ;;  %v3506_v55 = vpop.eup %3505  ;;  %v1474_v17 = vsel %vm786_vm1, %v1463_v54, 0 }
 0x755   : > { %3264 = vmatprep.subr.msk.bf16.mxu0 %vm786_vm1, %v1463_v54  ;;  %v1385_v61 = vmul.f32 %v3506_v55, %v3500_v43 }
 0x757   : > { %v1461_v20 = vpop.permute.xlu1 %1460 }
 0x758   : > { %v3508_v58 = vpop.eup %3507  ;;  %v1471_v21 = vsel %vm786_vm1, %v1461_v20, 0 }
 0x759   : > { %v3510_v59 = vpop.eup %3509  ;;  %v1386_v62 = vmul.f32 %v3508_v58, %v3502_v46 }
 0x75a   : > { %v1387_v2 = vmul.f32 %v3510_v59, %v3504_v47 }
 0x75b   : > { %v1388_v5 = vpack.c.bf16 %v1386_v62, %v1385_v61  ;;  %v1459_v22 = vpop.permute.xlu1 %1458 }
 0x75c   : > { %v1389_v12 = vpack.c.bf16 %v1387_v2, %v1387_v2 }
 0x75d   : > { %3172 = vmatprep.mubr.msk.bf16.mxu0 %vm847_vm3, %v1388_v5 }
 0x75e   : > { %3173 = vmatmul.mubr.msk.bf16.vlgmr.msra.gmra.mxu0 %vm847_vm3, %v1389_v12 }
 0x75f   : > { %3177 = vmatpush3.bf16.xpose.msra.mxu0 %v1474_v17  ;;  %3180 = vmatprep.mubr.msk.bf16.mxu0 %vm786_vm1, %v1457_v19 }
 0x760   : > { %3265 = vmatprep.subr.msk.bf16.mxu0 %vm786_vm1, %v1461_v20 }
 0x767   : > { %3179 = vmatpush3.bf16.xpose.msra.mxu0 %v1471_v21 }
 0x76e   : > { %3181 = vmatmul.mubr.msk.bf16.vlgmr.msra.gmra.mxu0 %vm786_vm1, %v1459_v22 }
 0x81e   : > { %v4293_v23 = vpop.f32.mrf.mxu0 }
 0x820   : > { %v4295_v24 = vpop.f32.mrf.mxu0 }
 0x822   : > { %v3175_v26 = vpop.f32.mrf.mxu0 }
 0x824   : > { %v4297_v27 = vpop.f32.mrf.mxu0 }
 0x825   : > { %v3388_v29 = vpack.i.bf16 %v4297_v27, %v4295_v24 }
 0x82e   : > { %v3182_v30 = vpop.f32.mrf.mxu0 }
 0x82f   : > { %v1519_v37 = vadd.f32 %v3182_v30, %v2947_v32 }
 0x830   : > { %v1510_v33 = vpop.f32.mrf.mxu0 }
 0x831   : > { %v1511_v34 = vadd.f32 %v2945_v31, %v1510_v33  ;;  %v1530_v43 = vsel %vm847_vm3, %v1519_v37, -inf }
 0x832   : > { %v3183_v35 = vpop.f32.mrf.mxu0 }
 0x833   : > { %v1524_v38 = vsel %vm847_vm3, %v1511_v34, -inf }
 0x834   : > { %v1513_v39 = vpop.f32.mrf.mxu0  ;;  %1525 = vmax.xlane.f32.xlu0 %v1524_v38 }
 0x835   : > { %v1514_v40 = vadd.f32 %v2946_v36, %v1513_v39 }
 0x837   : > { %v1527_v41 = vsel %vm847_vm3, %v1514_v40, -inf }
 0x838   : > { %1528 = vmax.xlane.f32.xlu1 %v1527_v41  ;;  %1531 = vmax.xlane.f32.xlu0 %v1530_v43 }
 0x8bd   : > { %v1526_v45 = vpop.xlane.xlu0 %1525 }
 0x8be   : > { %v1533_v46 = vsub.f32 %v1511_v34, %v1526_v45 }
 0x8c0   : > { %v1536_v47 = vmul.f32 1.442695, %v1533_v46 }
 0x8c1   : > { %v1529_v48 = vpop.xlane.xlu1 %1528  ;;  %v1532_v49 = vpop.xlane.xlu0 %1531 }
 0x8c2   : > { %3511 = vpow2.f32 %v1536_v47  ;;  %v1534_v50 = vsub.f32 %v1514_v40, %v1529_v48  ;;  %v1535_v51 = vsub.f32 %v1519_v37, %v1532_v49  ;;  %v2952_v47 = vld [vmem:[%s4666_s5 + $0x78] sm:$0xff]  ;;  %v2954_v48 = vld [vmem:[%s4666_s5 + $0x88] sm:$0xff] }
 0x8c4   : > { %v1538_v42 = vmul.f32 1.442695, %v1534_v50  ;;  %v1540_v44 = vmul.f32 1.442695, %v1535_v51 }
 0x8c6   : > { %3513 = vpow2.f32 %v1538_v42  ;;  %v2953_v42 = vld [vmem:[%s4666_s5 + $0x80] sm:$0xff] }
 0x8c7   : > { %3515 = vpow2.f32 %v1540_v44 }
 0x8cf   : > { %v3512_v52 = vpop.eup %3511 }
 0x8d0   : > { %v1542_v53 = vsel %vm847_vm3, %v3512_v52, 0.0 }
 0x8d1   : > { %1543 = vadd.xlane.f32.xlu0 %v1542_v53 }
 0x8d3   : > { %v3514_v54 = vpop.eup %3513 }
 0x8d4   : > { %v3516_v55 = vpop.eup %3515  ;;  %v1545_v58 = vsel %vm847_vm3, %v3514_v54, 0.0 }
 0x8d5   : > { %1546 = vadd.xlane.f32.xlu0 %v1545_v58  ;;  %v1548_v59 = vsel %vm847_vm3, %v3516_v55, 0.0 }
 0x8d6   : > { %1549 = vadd.xlane.f32.xlu1 %v1548_v59 }
 0x8e7   : > { %1559 = vrot.lane.b32.xlu1 %v4067_v10, %s3777_s27 }
 0x8eb   : > { %1631 = vrot.lane.b32.xlu1 %v4069_v13, %s3778_s24  ;;  %1561 = vrot.lane.b32.xlu0 %v4101_v28, %s3777_s27 }
 0x8ef   : > { %1629 = vrot.lane.b32.xlu1 %v4076_v16, %s3778_s24  ;;  %1625 = vrot.lane.b32.xlu0 %v4065_v9, %s3779_s18 }
 0x8f3   : > { %1627 = vrot.lane.b32.xlu1 %v4081_v18, %s3779_s18 }
 0x95a   : > { %v1544_v61 = vpop.xlane.xlu0 %1543 }
 0x95b   : > { %3517 = vrcp.f32 %v1544_v61 }
 0x95e   : > { %v1547_v62 = vpop.xlane.xlu0 %1546 }
 0x95f   : > { %v1550_v2 = vpop.xlane.xlu1 %1549  ;;  %3519 = vrcp.f32 %v1547_v62 }
 0x960   : > { %3521 = vrcp.f32 %v1550_v2 }
 0x962   : > { %v1562_v5 = vpop.permute.xlu0 %1561 }
 0x963   : > { %v1560_v12 = vpop.permute.xlu1 %1559  ;;  %v1571_v17 = vsel %vm889_vm2, %v1562_v5, 0  ;;  %3266 = vmatprep.subr.msk.bf16.mxu1 %vm889_vm2, %v1562_v5 }
 0x964   : > { %3185 = vmatpush3.bf16.msra.mxu1 %v1571_v17 }
 0x965   : > { %3186 = vmatprep.subr.bf16.mxu1 %v1560_v12 }
 0x966   : > { %v1626_v35 = vpop.permute.xlu0 %1625 }
 0x967   : > { %v1632_v19 = vpop.permute.xlu1 %1631 }
 0x968   : > { %3187 = vmatpush3.bf16.msra.mxu1 %v1560_v12  ;;  %v3518_v20 = vpop.eup %3517  ;;  %v1643_v34 = vsel %vm786_vm1, %v1632_v19, 0 }
 0x969   : > { %3267 = vmatprep.subr.msk.bf16.mxu1 %vm786_vm1, %v1632_v19  ;;  %v1554_v26 = vmul.f32 %v3518_v20, %v3512_v52 }
 0x96b   : > { %v1630_v36 = vpop.permute.xlu1 %1629 }
 0x96c   : > { %v3520_v21 = vpop.eup %3519  ;;  %v1640_v37 = vsel %vm786_vm1, %v1630_v36, 0 }
 0x96d   : > { %v3522_v22 = vpop.eup %3521  ;;  %v1555_v30 = vmul.f32 %v3520_v21, %v3514_v54 }
 0x96e   : > { %v1556_v31 = vmul.f32 %v3522_v22, %v3516_v55 }
 0x96f   : > { %v1557_v32 = vpack.c.bf16 %v1555_v30, %v1554_v26  ;;  %v1628_v38 = vpop.permute.xlu1 %1627 }
 0x970   : > { %v1558_v33 = vpack.c.bf16 %v1556_v31, %v1556_v31 }
 0x971   : > { %3188 = vmatprep.mubr.msk.bf16.mxu1 %vm847_vm3, %v1557_v32 }
 0x972   : > { %3189 = vmatmul.mubr.msk.bf16.vlgmr.msra.gmra.mxu1 %vm847_vm3, %v1558_v33 }
 0x973   : > { %3193 = vmatpush3.bf16.xpose.msra.mxu1 %v1643_v34  ;;  %3196 = vmatprep.mubr.msk.bf16.mxu1 %vm786_vm1, %v1626_v35 }
 0x974   : > { %3268 = vmatprep.subr.msk.bf16.mxu1 %vm786_vm1, %v1630_v36 }
 0x97b   : > { %3195 = vmatpush3.bf16.xpose.msra.mxu1 %v1640_v37 }
 0x982   : > { %3197 = vmatmul.mubr.msk.bf16.vlgmr.msra.gmra.mxu1 %vm786_vm1, %v1628_v38 }
 0xa32   : > { %v4338_v39 = vpop.f32.mrf.mxu1 }
 0xa34   : > { %v4340_v40 = vpop.f32.mrf.mxu1 }
 0xa36   : > { %v3191_v41 = vpop.f32.mrf.mxu1 }
 0xa38   : > { %v4342_v43 = vpop.f32.mrf.mxu1 }
 0xa39   : > { %v3393_v45 = vpack.i.bf16 %v4342_v43, %v4340_v40  ;;  %v3426_v40 = vld [vmem:[#allocation7 + $0x10] sm:$0xff]   ;;  %v3427_v43 = vld [vmem:[#allocation7 + $0x8] sm:$0xff]  }
 0xa42   : > { %v3198_v46 = vpop.f32.mrf.mxu1 }
 0xa43   : > { %v1688_v44 = vadd.f32 %v3198_v46, %v2954_v48 }
 0xa44   : > { %v1679_v49 = vpop.f32.mrf.mxu1 }
 0xa45   : > { %v1680_v50 = vadd.f32 %v2952_v47, %v1679_v49  ;;  %v1699_v58 = vsel %vm847_vm3, %v1688_v44, -inf }
 0xa46   : > { %v3199_v51 = vpop.f32.mrf.mxu1 }
 0xa47   : > { %v1693_v52 = vsel %vm847_vm3, %v1680_v50, -inf }
 0xa48   : > { %v1682_v53 = vpop.f32.mrf.mxu1  ;;  %1694 = vmax.xlane.f32.xlu0 %v1693_v52 }
 0xa49   : > { %v1683_v54 = vadd.f32 %v2953_v42, %v1682_v53 }
 0xa4b   : > { %v1696_v55 = vsel %vm847_vm3, %v1683_v54, -inf }
 0xa4c   : > { %1697 = vmax.xlane.f32.xlu1 %v1696_v55  ;;  %1700 = vmax.xlane.f32.xlu0 %v1699_v58 }
 0xad1   : > { %v1695_v59 = vpop.xlane.xlu0 %1694 }
 0xad2   : > { %v1702_v61 = vsub.f32 %v1680_v50, %v1695_v59 }
 0xad4   : > { %v1705_v62 = vmul.f32 1.442695, %v1702_v61 }
 0xad5   : > { %v1698_v2 = vpop.xlane.xlu1 %1697  ;;  %v1701_v5 = vpop.xlane.xlu0 %1700 }
 0xad6   : > { %3523 = vpow2.f32 %v1705_v62  ;;  %v1703_v12 = vsub.f32 %v1683_v54, %v1698_v2  ;;  %v1704_v17 = vsub.f32 %v1688_v44, %v1701_v5 }
 0xad8   : > { %v1707_v19 = vmul.f32 1.442695, %v1703_v12  ;;  %v1709_v20 = vmul.f32 1.442695, %v1704_v17  ;;  %v2959_v17 = vld [vmem:[%s4666_s5 + $0x90] sm:$0xff] }
 0xada   : > { %3525 = vpow2.f32 %v1707_v19  ;;  %v2961_v19 = vld [vmem:[%s4666_s5 + $0xa0] sm:$0xff] }
 0xadb   : > { %3527 = vpow2.f32 %v1709_v20 }
 0xae3   : > { %v3524_v21 = vpop.eup %3523 }
 0xae4   : > { %v1711_v22 = vsel %vm847_vm3, %v3524_v21, 0.0 }
 0xae5   : > { %1712 = vadd.xlane.f32.xlu0 %v1711_v22 }
 0xae7   : > { %v3526_v26 = vpop.eup %3525 }
 0xae8   : > { %v3528_v30 = vpop.eup %3527  ;;  %v1714_v31 = vsel %vm847_vm3, %v3526_v26, 0.0 }
 0xae9   : > { %1715 = vadd.xlane.f32.xlu0 %v1714_v31  ;;  %v1717_v32 = vsel %vm847_vm3, %v3528_v30, 0.0 }
 0xaea   : > { %1718 = vadd.xlane.f32.xlu1 %v1717_v32 }
 0xafb   : > { %1728 = vrot.lane.b32.xlu1 %v4067_v10, %s3779_s18 }
 0xaff   : > { %1800 = vrot.lane.b32.xlu1 %v4069_v13, %s3780_s21  ;;  %1730 = vrot.lane.b32.xlu0 %v4101_v28, %s3779_s18  ;;  %s3783_s18 = smov 72  }
 0xb03   : > { %1798 = vrot.lane.b32.xlu1 %v4076_v16, %s3780_s21  ;;  %1794 = vrot.lane.b32.xlu0 %v4065_v9, %s3781_s17 }
 0xb07   : > { %1796 = vrot.lane.b32.xlu1 %v4081_v18, %s3781_s17 }
 0xb6e   : > { %v1713_v33 = vpop.xlane.xlu0 %1712 }
 0xb6f   : > { %3529 = vrcp.f32 %v1713_v33 }
 0xb72   : > { %v1716_v34 = vpop.xlane.xlu0 %1715 }
 0xb73   : > { %v1719_v35 = vpop.xlane.xlu1 %1718  ;;  %3531 = vrcp.f32 %v1716_v34 }
 0xb74   : > { %3533 = vrcp.f32 %v1719_v35 }
 0xb76   : > { %v1731_v36 = vpop.permute.xlu0 %1730 }
 0xb77   : > { %v1729_v37 = vpop.permute.xlu1 %1728  ;;  %v1740_v38 = vsel %vm889_vm2, %v1731_v36, 0  ;;  %3269 = vmatprep.subr.msk.bf16.mxu0 %vm889_vm2, %v1731_v36 }
 0xb78   : > { %3201 = vmatpush3.bf16.msra.mxu0 %v1740_v38 }
 0xb79   : > { %3202 = vmatprep.subr.bf16.mxu0 %v1729_v37 }
 0xb7a   : > { %v1795_v53 = vpop.permute.xlu0 %1794 }
 0xb7b   : > { %v1801_v41 = vpop.permute.xlu1 %1800 }
 0xb7c   : > { %3203 = vmatpush3.bf16.msra.mxu0 %v1729_v37  ;;  %v3530_v46 = vpop.eup %3529  ;;  %v1812_v52 = vsel %vm786_vm1, %v1801_v41, 0 }
 0xb7d   : > { %3270 = vmatprep.subr.msk.bf16.mxu0 %vm786_vm1, %v1801_v41  ;;  %v1723_v49 = vmul.f32 %v3530_v46, %v3524_v21 }
 0xb7f   : > { %v1799_v54 = vpop.permute.xlu1 %1798 }
 0xb80   : > { %v3532_v47 = vpop.eup %3531  ;;  %v1809_v55 = vsel %vm786_vm1, %v1799_v54, 0 }
 0xb81   : > { %v3534_v48 = vpop.eup %3533  ;;  %v1724_v50 = vmul.f32 %v3532_v47, %v3526_v26  ;;  %v2960_v26 = vld [vmem:[%s4666_s5 + $0x98] sm:$0xff] }
 0xb82   : > { %v1725_v51 = vmul.f32 %v3534_v48, %v3528_v30 }
 0xb83   : > { %v1726_v42 = vpack.c.bf16 %v1724_v50, %v1723_v49  ;;  %v1797_v58 = vpop.permute.xlu1 %1796 }
 0xb84   : > { %v1727_v44 = vpack.c.bf16 %v1725_v51, %v1725_v51 }
 0xb85   : > { %3204 = vmatprep.mubr.msk.bf16.mxu0 %vm847_vm3, %v1726_v42 }
 0xb86   : > { %3205 = vmatmul.mubr.msk.bf16.vlgmr.msra.gmra.mxu0 %vm847_vm3, %v1727_v44 }
 0xb87   : > { %3209 = vmatpush3.bf16.xpose.msra.mxu0 %v1812_v52  ;;  %3212 = vmatprep.mubr.msk.bf16.mxu0 %vm786_vm1, %v1795_v53 }
 0xb88   : > { %3271 = vmatprep.subr.msk.bf16.mxu0 %vm786_vm1, %v1799_v54 }
 0xb8f   : > { %3211 = vmatpush3.bf16.xpose.msra.mxu0 %v1809_v55 }
 0xb96   : > { %3213 = vmatmul.mubr.msk.bf16.vlgmr.msra.gmra.mxu0 %vm786_vm1, %v1797_v58 }
 0xc46   : > { %v4383_v59 = vpop.f32.mrf.mxu0 }
 0xc48   : > { %v4385_v61 = vpop.f32.mrf.mxu0 }
 0xc4a   : > { %v3207_v62 = vpop.f32.mrf.mxu0 }
 0xc4c   : > { %v4387_v2 = vpop.f32.mrf.mxu0 }
 0xc4d   : > { %v3398_v5 = vpack.i.bf16 %v4387_v2, %v4385_v61 }
 0xc56   : > { %v3214_v12 = vpop.f32.mrf.mxu0 }
 0xc57   : > { %v1857_v30 = vadd.f32 %v3214_v12, %v2961_v19 }
 0xc58   : > { %v1848_v20 = vpop.f32.mrf.mxu0 }
 0xc59   : > { %v1849_v21 = vadd.f32 %v2959_v17, %v1848_v20  ;;  %v1868_v35 = vsel %vm847_vm3, %v1857_v30, -inf }
 0xc5a   : > { %v3215_v22 = vpop.f32.mrf.mxu0 }
 0xc5b   : > { %v1862_v31 = vsel %vm847_vm3, %v1849_v21, -inf }
 0xc5c   : > { %v1851_v32 = vpop.f32.mrf.mxu0  ;;  %1863 = vmax.xlane.f32.xlu0 %v1862_v31 }
 0xc5d   : > { %v1852_v33 = vadd.f32 %v2960_v26, %v1851_v32 }
 0xc5f   : > { %v1865_v34 = vsel %vm847_vm3, %v1852_v33, -inf }
 0xc60   : > { %1866 = vmax.xlane.f32.xlu1 %v1865_v34  ;;  %1869 = vmax.xlane.f32.xlu0 %v1868_v35 }
 0xce5   : > { %v1864_v36 = vpop.xlane.xlu0 %1863 }
 0xce6   : > { %v1871_v37 = vsub.f32 %v1849_v21, %v1864_v36 }
 0xce8   : > { %v1874_v38 = vmul.f32 1.442695, %v1871_v37 }
 0xce9   : > { %v1867_v41 = vpop.xlane.xlu1 %1866  ;;  %v1870_v46 = vpop.xlane.xlu0 %1869 }
 0xcea   : > { %3535 = vpow2.f32 %v1874_v38  ;;  %v1872_v47 = vsub.f32 %v1852_v33, %v1867_v41  ;;  %v1873_v48 = vsub.f32 %v1857_v30, %v1870_v46 }
 0xcec   : > { %v1876_v49 = vmul.f32 1.442695, %v1872_v47  ;;  %v1878_v50 = vmul.f32 1.442695, %v1873_v48  ;;  %v2966_v48 = vld [vmem:[%s4666_s5 + $0xa8] sm:$0xff] }
 0xcee   : > { %3537 = vpow2.f32 %v1876_v49  ;;  %v2968_v49 = vld [vmem:[%s4666_s5 + $0xb8] sm:$0xff] }
 0xcef   : > { %3539 = vpow2.f32 %v1878_v50 }
 0xcf7   : > { %v3536_v51 = vpop.eup %3535 }
 0xcf8   : > { %v1880_v42 = vsel %vm847_vm3, %v3536_v51, 0.0 }
 0xcf9   : > { %1881 = vadd.xlane.f32.xlu0 %v1880_v42 }
 0xcfb   : > { %v3538_v44 = vpop.eup %3537 }
 0xcfc   : > { %v3540_v52 = vpop.eup %3539  ;;  %v1883_v53 = vsel %vm847_vm3, %v3538_v44, 0.0 }
 0xcfd   : > { %1884 = vadd.xlane.f32.xlu0 %v1883_v53  ;;  %v1886_v54 = vsel %vm847_vm3, %v3540_v52, 0.0 }
 0xcfe   : > { %1887 = vadd.xlane.f32.xlu1 %v1886_v54 }
 0xd0f   : > { %1897 = vrot.lane.b32.xlu1 %v4067_v10, %s3781_s17 }
 0xd13   : > { %1969 = vrot.lane.b32.xlu1 %v4069_v13, %s3782_s19  ;;  %1899 = vrot.lane.b32.xlu0 %v4101_v28, %s3781_s17 }
 0xd17   : > { %1967 = vrot.lane.b32.xlu1 %v4076_v16, %s3782_s19  ;;  %1963 = vrot.lane.b32.xlu0 %v4065_v9, %s3783_s18 }
 0xd1b   : > { %1965 = vrot.lane.b32.xlu1 %v4081_v18, %s3783_s18 }
 0xd82   : > { %v1882_v55 = vpop.xlane.xlu0 %1881 }
 0xd83   : > { %3541 = vrcp.f32 %v1882_v55 }
 0xd86   : > { %v1885_v58 = vpop.xlane.xlu0 %1884 }
 0xd87   : > { %v1888_v62 = vpop.xlane.xlu1 %1887  ;;  %3543 = vrcp.f32 %v1885_v58 }
 0xd88   : > { %3545 = vrcp.f32 %v1888_v62 }
 0xd8a   : > { %v1900_v13 = vpop.permute.xlu0 %1899 }
 0xd8b   : > { %v1898_v12 = vpop.permute.xlu1 %1897  ;;  %v1909_v17 = vsel %vm889_vm2, %v1900_v13, 0  ;;  %3272 = vmatprep.subr.msk.bf16.mxu1 %vm889_vm2, %v1900_v13 }
 0xd8c   : > { %3217 = vmatpush3.bf16.msra.mxu1 %v1909_v17 }
 0xd8d   : > { %3218 = vmatprep.subr.bf16.mxu1 %v1898_v12 }
 0xd8e   : > { %v1964_v32 = vpop.permute.xlu0 %1963 }
 0xd8f   : > { %v1970_v16 = vpop.permute.xlu1 %1969 }
 0xd90   : > { %3219 = vmatpush3.bf16.msra.mxu1 %v1898_v12  ;;  %v3542_v9 = vpop.eup %3541  ;;  %v1981_v31 = vsel %vm786_vm1, %v1970_v16, 0 }
 0xd91   : > { %3273 = vmatprep.subr.msk.bf16.mxu1 %vm786_vm1, %v1970_v16  ;;  %v1892_v20 = vmul.f32 %v3542_v9, %v3536_v51 }
 0xd93   : > { %v1968_v33 = vpop.permute.xlu1 %1967 }
 0xd94   : > { %v3544_v18 = vpop.eup %3543  ;;  %v1978_v34 = vsel %vm786_vm1, %v1968_v33, 0 }
 0xd95   : > { %v3546_v19 = vpop.eup %3545  ;;  %v1893_v21 = vmul.f32 %v3544_v18, %v3538_v44  ;;  %v2967_v44 = vld [vmem:[%s4666_s5 + $0xb0] sm:$0xff] }
 0xd96   : > { %v1894_v22 = vmul.f32 %v3546_v19, %v3540_v52 }
 0xd97   : > { %v1895_v26 = vpack.c.bf16 %v1893_v21, %v1892_v20  ;;  %v1966_v35 = vpop.permute.xlu1 %1965 }
 0xd98   : > { %v1896_v30 = vpack.c.bf16 %v1894_v22, %v1894_v22 }
 0xd99   : > { %3220 = vmatprep.mubr.msk.bf16.mxu1 %vm847_vm3, %v1895_v26 }
 0xd9a   : > { %3221 = vmatmul.mubr.msk.bf16.vlgmr.msra.gmra.mxu1 %vm847_vm3, %v1896_v30 }
 0xd9b   : > { %3225 = vmatpush3.bf16.xpose.msra.mxu1 %v1981_v31  ;;  %3228 = vmatprep.mubr.msk.bf16.mxu1 %vm786_vm1, %v1964_v32 }
 0xd9c   : > { %3274 = vmatprep.subr.msk.bf16.mxu1 %vm786_vm1, %v1968_v33 }
 0xda3   : > { %3227 = vmatpush3.bf16.xpose.msra.mxu1 %v1978_v34 }
 0xdaa   : > { %3229 = vmatmul.mubr.msk.bf16.vlgmr.msra.gmra.mxu1 %vm786_vm1, %v1966_v35 }
 0xdab   : > { %2505 = vmatprep.mubr.bf16.mxu1 %v3768_v25 }
 0xe5a   : > { %v3222_v36 = vpop.f32.mrf.mxu1 }
 0xe5c   : > { %v1945_v37 = vpop.f32.mrf.mxu1 }
 0xe5e   : > { %v3223_v38 = vpop.f32.mrf.mxu1 }
 0xe60   : > { %v1948_v41 = vpop.f32.mrf.mxu1 }
 0xe61   : > { %v3403_v46 = vpack.i.bf16 %v1948_v41, %v1945_v37 }
 0xe6a   : > { %v3230_v47 = vpop.f32.mrf.mxu1 }
 0xe6b   : > { %v2026_v52 = vadd.f32 %v3230_v47, %v2968_v49 }
 0xe6c   : > { %v2017_v50 = vpop.f32.mrf.mxu1 }
 0xe6d   : > { %v2018_v51 = vadd.f32 %v2966_v48, %v2017_v50  ;;  %v2037_v62 = vsel %vm847_vm3, %v2026_v52, -inf }
 0xe6e   : > { %v3231_v42 = vpop.f32.mrf.mxu1 }
 0xe6f   : > { %v2031_v53 = vsel %vm847_vm3, %v2018_v51, -inf }
 0xe70   : > { %v2020_v54 = vpop.f32.mrf.mxu1  ;;  %2032 = vmax.xlane.f32.xlu0 %v2031_v53 }
 0xe71   : > { %v2021_v55 = vadd.f32 %v2967_v44, %v2020_v54 }
 0xe73   : > { %v2034_v58 = vsel %vm847_vm3, %v2021_v55, -inf }
 0xe74   : > { %2035 = vmax.xlane.f32.xlu1 %v2034_v58  ;;  %2038 = vmax.xlane.f32.xlu0 %v2037_v62 }
 0xef9   : > { %v2033_v13 = vpop.xlane.xlu0 %2032 }
 0xefa   : > { %v2040_v12 = vsub.f32 %v2018_v51, %v2033_v13 }
 0xefc   : > { %v2043_v17 = vmul.f32 1.442695, %v2040_v12 }
 0xefd   : > { %v2036_v16 = vpop.xlane.xlu1 %2035  ;;  %v2039_v9 = vpop.xlane.xlu0 %2038 }
 0xefe   : > { %3547 = vpow2.f32 %v2043_v17  ;;  %v2041_v18 = vsub.f32 %v2021_v55, %v2036_v16  ;;  %v2042_v19 = vsub.f32 %v2026_v52, %v2039_v9 }
 0xf00   : > { %v2045_v20 = vmul.f32 1.442695, %v2041_v18  ;;  %v2047_v21 = vmul.f32 1.442695, %v2042_v19 }
 0xf02   : > { %3549 = vpow2.f32 %v2045_v20 }
 0xf03   : > { %3551 = vpow2.f32 %v2047_v21 }
 0xf0b   : > { %v3548_v22 = vpop.eup %3547 }
 0xf0c   : > { %v2049_v26 = vsel %vm847_vm3, %v3548_v22, 0.0 }
 0xf0d   : > { %2050 = vadd.xlane.f32.xlu0 %v2049_v26 }
 0xf0f   : > { %v3550_v30 = vpop.eup %3549 }
 0xf10   : > { %v3552_v31 = vpop.eup %3551  ;;  %v2052_v32 = vsel %vm847_vm3, %v3550_v30, 0.0 }
 0xf11   : > { %2053 = vadd.xlane.f32.xlu0 %v2052_v32  ;;  %v2055_v33 = vsel %vm847_vm3, %v3552_v31, 0.0 }
 0xf12   : > { %2056 = vadd.xlane.f32.xlu1 %v2055_v33 }
 0xf23   : > { %2066 = vrot.lane.b32.xlu1 %v4067_v10, %s3783_s18 }
 0xf27   : > { %3379 = vrot.lane.b32.xlu1 %v3378_v7, %s3782_s19  ;;  %2068 = vrot.lane.b32.xlu0 %v4101_v28, %s3783_s18  ;;  %s3279_s18 = smul.u32 384, %s3892_s25  ;;  %s2782_s25 = scalar_lea.sflag [#allocation4], %s4015_s26 }
 0xf2b   : > { %2135 = vrot.lane.b32.xlu1 %v4240_v0, %s3782_s19  ;;  %3384 = vrot.lane.b32.xlu0 %v3383_v15, %s3780_s21 }
 0xf2f   : > { %2147 = vrot.lane.b32.xlu1 %v4248_v8, %s3780_s21  ;;  %3389 = vrot.lane.b32.xlu0 %v3388_v29, %s3778_s24  ;;  %s4728_s21 = sld [smem:[#allocation21_spill]] }
 0xf33   : > { %2159 = vrot.lane.b32.xlu1 %v4293_v23, %s3778_s24  ;;  %3394 = vrot.lane.b32.xlu0 %v3393_v45, %s3776_s23  ;;  %v3428_v45 = vld [vmem:[#allocation7] sm:$0xff]   ;;  %s583_s24 = scalar_lea.vmem [#allocation10], %s3278_s28  ;;  %s4613_s28 = scalar_lea.hbm %s4729_s29, %s3279_s18 }
 0xf34   : > { %s2795_s17 = sshll.u32 %s583_s24, 4  ;;  %s4616_s17 = int_to_ptr.vmem [resolvable:$true] %s2795_s17 }
 0xf35   : > { %s3686_s15 = scalar_lea.vmem %s4616_s17, 384  ;;  %p4730_p12 = scmp.ne.s32.totalorder %s4728_s21, 0 }
 0xf36   : > { %p3687_p11 = scmp.ne.s32.totalorder %s4616_s17, %s3686_s15 }
 0xf37   : > { %2171 = vrot.lane.b32.xlu1 %v4338_v39, %s3776_s23  ;;  %3399 = vrot.lane.b32.xlu0 %v3398_v5, %s3774_s30  ;;  %v3425_v39 = vld [vmem:[#allocation7 + $0x18] sm:$0xff]  }
 0xf38   : > { %p3688_p13 = pnand %p3687_p11, %p4730_p12 }
 0xf3a   : > { %p3689_p0 = pneg %p3688_p13 }
 0xf3b   : > { %2183 = vrot.lane.b32.xlu1 %v4383_v59, %s3774_s30  ;;  %3404 = vrot.lane.b32.xlu0 %v3403_v46, %s3772_s0 }
 0xf3f   : > { %2195 = vrot.lane.b32.xlu1 %v3222_v36, %s3772_s0 }
 0xf96   : > { %v2051_v10 = vpop.xlane.xlu0 %2050 }
 0xf97   : > { %3553 = vrcp.f32 %v2051_v10 }
 0xf9a   : > { %v2054_v28 = vpop.xlane.xlu0 %2053 }
 0xf9b   : > { %v2057_v0 = vpop.xlane.xlu1 %2056  ;;  %3555 = vrcp.f32 %v2054_v28 }
 0xf9c   : > { %3557 = vrcp.f32 %v2057_v0 }
 0xf9e   : > { %v2069_v4 = vpop.permute.xlu0 %2068 }
 0xf9f   : > { %v2078_v6 = vsel %vm889_vm2, %v2069_v4, 0  ;;  %3275 = vmatprep.subr.msk.bf16.mxu0 %vm889_vm2, %v2069_v4  ;;  %v2067_v7 = vpop.permute.xlu1 %2066 }
 0xfa0   : > { %3233 = vmatpush3.bf16.msra.mxu0 %v2078_v6 }
 0xfa1   : > { %3234 = vmatprep.subr.bf16.mxu0 %v2067_v7 }
 0xfa2   : > { %v3385_v37 = vpop.permute.xlu0 %3384 }
 0xfa3   : > { %v3380_v35 = vpop.permute.xlu1 %3379  ;;  %v3387_v44 = vunpack.i.h.bf16 %v3385_v37  ;;  %v3386_v52 = vunpack.i.l.bf16 %v3385_v37 }
 0xfa4   : > { %3235 = vmatpush3.bf16.msra.mxu0 %v2067_v7  ;;  %v3554_v8 = vpop.eup %3553  ;;  %v3382_v51 = vunpack.i.h.bf16 %v3380_v35  ;;  %v3381_v42 = vunpack.i.l.bf16 %v3380_v35 }
 0xfa5   : > { %v2061_v15 = vmul.f32 %v3554_v8, %v3548_v22  ;;  %3240 = vmatprep.subr.bf16.mxu0 %v3425_v39 }
 0xfa6   : > { %v3390_v41 = vpop.permute.xlu0 %3389  ;;  %v2213_v53 = vsel %vm786_vm1, %v4238_v3, %v3382_v51  ;;  %v2212_v54 = vsel %vm786_vm1, %v4236_v1, %v3381_v42 }
 0xfa7   : > { %v2136_v36 = vpop.permute.xlu1 %2135  ;;  %v3391_v55 = vunpack.i.l.bf16 %v3390_v41  ;;  %v3392_v58 = vunpack.i.h.bf16 %v3390_v41  ;;  %v2216_v18 = vsel %vm2215_vm4, %v2212_v54, %v3386_v52  ;;  %v2217_v19 = vsel %vm2215_vm4, %v2213_v53, %v3387_v44  ;;  %v3578_v41 = vld [vmem:[%s4021_s3 + $0x10] sm:$0xff] }
 0xfa8   : > { %v3556_v11 = vpop.eup %3555  ;;  %v2214_v17 = vsel %vm786_vm1, %v4234_v63, %v2136_v36  ;;  %v3577_v36 = vld [vmem:[%s4021_s3] sm:$0xff] }
 0xfa9   : > { %v3558_v14 = vpop.eup %3557  ;;  %v2062_v23 = vmul.f32 %v3556_v11, %v3550_v30  ;;  %v2219_v21 = vsel %vm847_vm3, %v2216_v18, %v3391_v55  ;;  %v2220_v30 = vsel %vm847_vm3, %v2217_v19, %v3392_v58 }
 0xfaa   : > { %v2063_v24 = vmul.f32 %v3558_v14, %v3552_v31  ;;  %v3395_v47 = vpop.permute.xlu0 %3394 }
 0xfab   : > { %v2064_v27 = vpack.c.bf16 %v2062_v23, %v2061_v15  ;;  %v2148_v38 = vpop.permute.xlu1 %2147  ;;  %v3396_v62 = vunpack.i.l.bf16 %v3395_v47  ;;  %v3397_v16 = vunpack.i.h.bf16 %v3395_v47 }
 0xfac   : > { %v2065_v29 = vpack.c.bf16 %v2063_v24, %v2063_v24  ;;  %v2218_v3 = vsel %vm2215_vm4, %v2214_v17, %v2148_v38 }
 0xfad   : > { %3236 = vmatprep.mubr.msk.bf16.mxu0 %vm847_vm3, %v2064_v27  ;;  %v2223_v31 = vsel %vm2222_vm5, %v2219_v21, %v3396_v62  ;;  %v2224_v33 = vsel %vm2222_vm5, %v2220_v30, %v3397_v16  ;;  %v3434_v21 = vld [vmem:[#allocation8 + $0x24] ss:$8 sps:$4 sm:$0xff]   ;;  %v3435_v30 = vld [vmem:[#allocation8 + $0x10] ss:$8 sps:$4 sm:$0xff]  }
 0xfae   : > { %3237 = vmatmul.mubr.msk.bf16.vlgmr.msra.gmra.mxu0 %vm847_vm3, %v2065_v29  ;;  %v3400_v49 = vpop.permute.xlu0 %3399 }
 0xfaf   : > { %3241 = vmatpush3.bf16.msra.mxu0 %v3425_v39  ;;  %v2160_v46 = vpop.permute.xlu1 %2159  ;;  %v3401_v9 = vunpack.i.l.bf16 %v3400_v49  ;;  %v3402_v20 = vunpack.i.h.bf16 %v3400_v49  ;;  %v2973_v39 = vld [vmem:[%s4668_s7] ss:$0 sm:$0xff] }
 0xfb0   : > { %3242 = vmatprep.subr.bf16.mxu0 %v3426_v40  ;;  %v2221_v1 = vsel %vm847_vm3, %v2218_v3, %v2160_v46  ;;  %v3579_v49 = vld [vmem:[%s4021_s3 + $0x8] sm:$0xff]  ;;  %s4727_s3 = sld [smem:[#allocation26_spill]] }
 0xfb1   : > { %v2227_v10 = vsel %vm2226_vm6, %v2223_v31, %v3401_v9  ;;  %v2228_v4 = vsel %vm2226_vm6, %v2224_v33, %v3402_v20  ;;  %v3431_v20 = vld [vmem:[#allocation8 + $0x34] ss:$8 sps:$4 sm:$0xff]   ;;  %v3440_v31 = vld [vmem:[#allocation8 + $0x4] ss:$8 sps:$4 sm:$0xff]  }
 0xfb2   : > { %v3405_v13 = vpop.permute.xlu0 %3404  ;;  %2481 = vmatprep.subr.bf16.mxu1 %v3431_v20 }
 0xfb3   : > { %3243 = vmatpush3.bf16.msra.mxu0 %v3426_v40  ;;  %v2172_v48 = vpop.permute.xlu1 %2171  ;;  %v3407_v22 = vunpack.i.h.bf16 %v3405_v13  ;;  %v3406_v26 = vunpack.i.l.bf16 %v3405_v13 }
 0xfb4   : > { %3244 = vmatprep.subr.bf16.mxu0 %v3427_v43  ;;  %v2225_v32 = vsel %vm2222_vm5, %v2221_v1, %v2172_v48  ;;  %v3429_v1 = vld [vmem:[#allocation8 + $0x30] ss:$8 sps:$4 sm:$0xff]  }
 0xfb5   : > { %v2231_v11 = vsel %vm2230_vm7, %v2227_v10, %v3406_v26  ;;  %v2232_v14 = vsel %vm2230_vm7, %v2228_v4, %v3407_v22  ;;  %2482 = vmatpush1.bf16.msra.mxu1 %v3429_v1  ;;  %v3432_v22 = vld [vmem:[#allocation8 + $0x20] ss:$8 sps:$4 sm:$0xff]   ;;  %v3437_v26 = vld [vmem:[#allocation8 + $0x14] ss:$8 sps:$4 sm:$0xff]  }
 0xfb6   : > { %2483 = vmatprep.subr.bf16.mxu1 %v3434_v21 }
 0xfb7   : > { %3245 = vmatpush3.bf16.msra.mxu0 %v3427_v43  ;;  %v2184_v50 = vpop.permute.xlu1 %2183 }
 0xfb8   : > { %3246 = vmatprep.subr.bf16.mxu0 %v3428_v45  ;;  %v2229_v28 = vsel %vm2226_vm6, %v2225_v32, %v2184_v50  ;;  %v3438_v32 = vld [vmem:[#allocation8] ss:$8 sps:$4 sm:$0xff]  }
 0xfb9   : > { %2484 = vmatpush1.bf16.msra.mxu1 %v3432_v22 }
 0xfba   : > { %2485 = vmatprep.subr.bf16.mxu1 %v3437_v26 }
 0xfbb   : > { %3247 = vmatpush3.bf16.msra.mxu0 %v3428_v45  ;;  %v2196_v12 = vpop.permute.xlu1 %2195  ;;  %v2980_v45 = vld [vmem:[%s4669_s8] ss:$0 sm:$0xff] }
 0xfbc   : > { %v2233_v6 = vsel %vm2230_vm7, %v2229_v28, %v2196_v12 }
 0xfbd   : > { %2486 = vmatpush1.bf16.msra.mxu1 %v3435_v30 }
 0xfbe   : > { %2487 = vmatprep.subr.bf16.mxu1 %v3440_v31 }
 0xfc1   : > { %2488 = vmatpush1.bf16.msra.mxu1 %v3438_v32 }
0x106e   : > { %v3238_v59 = vpop.f32.mrf.mxu0 }
0x106f   : > { %2207 = vrot.lane.b32.xlu1 %v3238_v59, %s3769_s20 }
0x1070   : > { %v2114_v61 = vpop.f32.mrf.mxu0 }
0x1072   : > { %v3239_v2 = vpop.f32.mrf.mxu0 }
0x1074   : > { %v2117_v5 = vpop.f32.mrf.mxu0 }
0x1075   : > { %v3408_v34 = vpack.i.bf16 %v2117_v5, %v2114_v61 }
0x1077   : > { %3409 = vrot.lane.b32.xlu0 %v3408_v34, %s3769_s20  ;;  %s3690_s20 = sshll.u32 %s3784_s16, 4  ;;  %s3691_s20 = int_to_ptr.vmem [resolvable:$false] %s3690_s20 }
0x1078   : > { %s3692_s0 = scalar_lea.vmem %s3691_s20, 768  ;;  %p3693_p5 = scmp.lt.s32.totalorder %s4616_s17, %s3691_s20 }
0x1079   : > { %p3694_p10 = scmp.lt.s32.totalorder %s3692_s0, %s3686_s15 }
0x107b   : > { %p3695_p2 = por %p3694_p10, %p3693_p5 }
0x107d   : > { %p3696_p9 = pnand %p3695_p2, %p3689_p0 }
0x10e1   : > { %v2208_v63 = vpop.permute.xlu1 %2207 }
0x10e2   : > { %v2237_v15 = vsel %vm2234_vm8, %v2233_v6, %v2208_v63 }
0x10e3   : > { %v2239_v29 = vpack.c.bf16 %v2237_v15, %v2237_v15  ;;  %v2981_v15 = vld [vmem:[%s4670_s9] ss:$0 sm:$0xff] }
0x10e9   : > { %v3410_v0 = vpop.permute.xlu0 %3409 }
0x10ea   : > { %v3412_v7 = vunpack.i.h.bf16 %v3410_v0  ;;  %v3411_v8 = vunpack.i.l.bf16 %v3410_v0 }
0x10ec   : > { %v2235_v23 = vsel %vm2234_vm8, %v2231_v11, %v3411_v8  ;;  %v2236_v24 = vsel %vm2234_vm8, %v2232_v14, %v3412_v7 }
0x10ed   : > { %v2238_v27 = vpack.c.bf16 %v2236_v24, %v2235_v23 }
0x10ef   : > { %3248 = vmatprep.mubr.msk.bf16.mxu0 %vm588_vm0, %v2238_v27 }
0x10f0   : > { %3249 = vmatmul.mubr.msk.bf16.vlgmr.msra.gmra.mxu0 %vm588_vm0, %v2239_v29 }
0x11b0   : > { %v3250_v40 = vpop.f32.mrf.mxu0 }
0x11b1   : > { %v2328_v43 = vadd.f32 %v3250_v40, %v2973_v39 }
0x11b2   : > { %v2319_v59 = vpop.f32.mrf.mxu0 }
0x11b3   : > { %v2320_v61 = vadd.f32 %v2973_v39, %v2319_v59  ;;  %v2342_v5 = vmul.f32 %v2980_v45, %v2328_v43 }
0x11b4   : > { %v3251_v2 = vpop.f32.mrf.mxu0 }
0x11b5   : > { %v2340_v34 = vmul.f32 %v2980_v45, %v2320_v61  ;;  %v4516_v46 = vadd.f32 %v3578_v41, %v2342_v5  ;;  %v3445_v41 = vld [vmem:[%s4674_s13 + $0x68] sm:$0xff]  }
0x11b6   : > { %v2322_v35 = vpop.f32.mrf.mxu0 }
0x11b7   : > { %v4513_v37 = vadd.f32 %v3577_v36, %v2340_v34  ;;  %v2323_v38 = vadd.f32 %v2973_v39, %v2322_v35  ;;  %v2352_v42 = vsel %vm588_vm0, %v4516_v46, 0.0  ;;  %v2982_v39 = vld [vmem:[%s4671_s10] ss:$0 sm:$0xff]  ;;  %v3441_v35 = vld [vmem:[%s4674_s13 + $0x78] sm:$0xff]  }
0x11b8   : > { %v3442_v36 = vld [vmem:[%s4674_s13 + $0x38] sm:$0xff]   ;;  %3084 = vmatprep.subr.bf16.mxu0 %v3441_v35 }
0x11b9   : > { %v2341_v47 = vmul.f32 %v2980_v45, %v2323_v38  ;;  %v2346_v48 = vsel %vm588_vm0, %v4513_v37, 0.0  ;;  %3085 = vmatpush3.bf16.msra.mxu0 %v3442_v36  ;;  %v3443_v38 = vld [vmem:[%s4674_s13 + $0x70] sm:$0xff]  }
0x11ba   : > { %2347 = vadd.xlane.f32.xlu0 %v2346_v48  ;;  %3086 = vmatprep.subr.bf16.mxu0 %v3443_v38  ;;  %v3447_v48 = vld [vmem:[%s4674_s13 + $0x60] sm:$0xff]  }
0x11bb   : > { %v4521_v50 = vadd.f32 %v3579_v49, %v2341_v47  ;;  %v3446_v47 = vld [vmem:[%s4674_s13 + $0x28] sm:$0xff]   ;;  %v3448_v49 = vld [vmem:[%s4674_s13 + $0x20] sm:$0xff]  }
0x11bd   : > { %v2349_v51 = vsel %vm588_vm0, %v4521_v50, 0.0 }
0x11be   : > { %2350 = vadd.xlane.f32.xlu1 %v2349_v51  ;;  %2353 = vadd.xlane.f32.xlu0 %v2352_v42  ;;  %v3449_v51 = vld [vmem:[%s4674_s13 + $0x58] sm:$0xff]  }
0x11bf   : > { %v3450_v42 = vld [vmem:[%s4674_s13 + $0x18] sm:$0xff]  }
0x1243   : > { %v2348_v44 = vpop.xlane.xlu0 %2347 }
0x1244   : > { %v2355_v52 = vmul.f32 0.015625, %v2348_v44  ;;  %v3451_v44 = vld [vmem:[%s4674_s13 + $0x50] sm:$0xff]  }
0x1246   : > { %v2358_v53 = vsub.f32 %v4513_v37, %v2355_v52  ;;  %v3452_v52 = vld [vmem:[%s4674_s13 + $0x10] sm:$0xff]  }
0x1247   : > { %v2351_v54 = vpop.xlane.xlu1 %2350  ;;  %v2354_v55 = vpop.xlane.xlu0 %2353 }
0x1248   : > { %v2356_v58 = vmul.f32 0.015625, %v2351_v54  ;;  %v2357_v62 = vmul.f32 0.015625, %v2354_v55  ;;  %v2361_v13 = vmul.f32 %v2358_v53, %v2358_v53  ;;  %v3454_v54 = vld [vmem:[%s4674_s13 + $0x8] sm:$0xff]   ;;  %v3455_v55 = vld [vmem:[%s4674_s13 + $0x40] sm:$0xff]  }
0x124a   : > { %v2359_v12 = vsub.f32 %v4521_v50, %v2356_v58  ;;  %v2360_v17 = vsub.f32 %v4516_v46, %v2357_v62  ;;  %v2364_v16 = vsel %vm588_vm0, %v2361_v13, 0.0  ;;  %v3456_v58 = vld [vmem:[%s4674_s13] sm:$0xff]  }
0x124b   : > { %2365 = vadd.xlane.f32.xlu0 %v2364_v16  ;;  %v2415_v62 = vld [vmem:[%s4673_s12] sm:$0x3] }
0x124c   : > { %v2362_v9 = vmul.f32 %v2359_v12, %v2359_v12  ;;  %v2363_v18 = vmul.f32 %v2360_v17, %v2360_v17  ;;  %v2420_v13 = vrot.slane %v2415_v62, %v663_v57 }
0x124e   : > { %v2367_v19 = vsel %vm588_vm0, %v2362_v9, 0.0  ;;  %v2370_v3 = vsel %vm588_vm0, %v2363_v18, 0.0 }
0x124f   : > { %2368 = vadd.xlane.f32.xlu0 %v2367_v19  ;;  %2371 = vadd.xlane.f32.xlu1 %v2370_v3 }
0x12d4   : > { %v2366_v63 = vpop.xlane.xlu0 %2365 }
0x12d5   : > { %v2373_v33 = vmul.f32 0.015625, %v2366_v63 }
0x12d7   : > { %v2376_v10 = vadd.f32 1e-05, %v2373_v33 }
0x12d8   : > { %v2372_v28 = vpop.xlane.xlu1 %2371  ;;  %v2369_v0 = vpop.xlane.xlu0 %2368 }
0x12d9   : > { %3559 = vrsqrt.f32 %v2376_v10  ;;  %v2375_v4 = vmul.f32 0.015625, %v2372_v28  ;;  %v2374_v6 = vmul.f32 0.015625, %v2369_v0 }
0x12db   : > { %v2378_v7 = vadd.f32 1e-05, %v2375_v4  ;;  %v2377_v8 = vadd.f32 1e-05, %v2374_v6 }
0x12dd   : > { %3561 = vrsqrt.f32 %v2378_v7 }
0x12de   : > { %3563 = vrsqrt.f32 %v2377_v8 }
0x12e6   : > { %v3560_v11 = vpop.eup %3559 }
0x12e7   : > { %v2382_v14 = vmul.f32 %v3560_v11, %v2358_v53  ;;  %v3453_v53 = vld [vmem:[%s4674_s13 + $0x48] sm:$0xff]  }
0x12e9   : > { %v2392_v29 = vmul.f32 %v2981_v15, %v2382_v14 }
0x12ea   : > { %v3562_v23 = vpop.eup %3561 }
0x12eb   : > { %v3564_v24 = vpop.eup %3563  ;;  %v2384_v43 = vmul.f32 %v3562_v23, %v2360_v17  ;;  %v2402_v45 = vadd.f32 %v2982_v39, %v2392_v29 }
0x12ec   : > { %v2383_v27 = vmul.f32 %v3564_v24, %v2359_v12  ;;  %v2424_v12 = vrot.slane %v2415_v62, %v667_v60 }
0x12ed   : > { %v2394_v2 = vmul.f32 %v2981_v15, %v2384_v43 }
0x12ee   : > { %v2393_v40 = vmul.f32 %v2981_v15, %v2383_v27 }
0x12ef   : > { %v2404_v5 = vadd.f32 %v2982_v39, %v2394_v2 }
0x12f0   : > { %v2403_v59 = vadd.f32 %v2982_v39, %v2393_v40 }
0x12f1   : > { %v2406_v34 = vpack.c.bf16 %v2404_v5, %v2404_v5 }
0x12f2   : > { %v2405_v61 = vpack.c.bf16 %v2403_v59, %v2402_v45 }
0x12f4   : > { %2991 = vmatmul.mubr.msk.bf16.vlgmr.msra.gmra.mxu1 %vm588_vm0, %v2405_v61 }
0x12f5   : > { %2515 = vmatprep.mubr.bf16.mxu1 %v3768_v25  ;;  %v3444_v25 = vld [vmem:[%s4674_s13 + $0x30] sm:$0xff]  }
0x12f6   : > { %3087 = vmatpush3.bf16.msra.mxu0 %v3444_v25 }
0x12f7   : > { %3088 = vmatprep.subr.bf16.mxu0 %v3445_v41 }
0x12fa   : > { %3089 = vmatpush3.bf16.msra.mxu0 %v3446_v47 }
0x12fb   : > { %3090 = vmatprep.subr.bf16.mxu0 %v3447_v48 }
0x12fc   : > { %2992 = vmatmul.mubr.msk.bf16.gmra.mxu1 %vm588_vm0, %v2406_v34 }
0x12fe   : > { %3091 = vmatpush3.bf16.msra.mxu0 %v3448_v49 }
0x12ff   : > { %3092 = vmatprep.subr.bf16.mxu0 %v3449_v51 }
0x1302   : > { %3093 = vmatpush3.bf16.msra.mxu0 %v3450_v42 }
0x1303   : > { %3094 = vmatprep.subr.bf16.mxu0 %v3451_v44 }
0x1306   : > { %3095 = vmatpush3.bf16.msra.mxu0 %v3452_v52 }
0x1307   : > { %3096 = vmatprep.subr.bf16.mxu0 %v3453_v53 }
0x130a   : > { %3097 = vmatpush3.bf16.msra.mxu0 %v3454_v54 }
0x130b   : > { %3098 = vmatprep.subr.bf16.mxu0 %v3455_v55 }
0x130e   : > { %3099 = vmatpush3.bf16.msra.mxu0 %v3456_v58 }
0x13b4   : > { %v2507_v17 = vpop.f32.mrf.mxu1 }
0x13b5   : > { %v2508_v16 = vadd.f32 %v2507_v17, %v2420_v13 }
0x13b6   : > { %v2509_v9 = vpop.f32.mrf.mxu1 }
0x13b7   : > { %v2530_v18 = vmul.f32 0.044715, %v2508_v16  ;;  %v2510_v19 = vadd.f32 %v2509_v9, %v2424_v12  ;;  %v2524_v54 = vmul.f32 0.5, %v2508_v16 }
0x13b8   : > { %v2511_v3 = vpop.f32.mrf.mxu1 }
0x13b9   : > { %v2536_v20 = vmul.f32 %v2530_v18, %v2508_v16  ;;  %v2531_v1 = vmul.f32 0.044715, %v2510_v19  ;;  %v2512_v21 = vadd.f32 %v2511_v3, %v2420_v13  ;;  %v2525_v44 = vmul.f32 0.5, %v2510_v19 }
0x13ba   : > { %v2513_v22 = vpop.f32.mrf.mxu1 }
0x13bb   : > { %v2542_v26 = vmul.f32 %v2536_v20, %v2508_v16  ;;  %v2537_v30 = vmul.f32 %v2531_v1, %v2510_v19  ;;  %v2532_v31 = vmul.f32 0.044715, %v2512_v21  ;;  %v2514_v32 = vadd.f32 %v2513_v22, %v2424_v12 }
0x13bc   : > { %v2517_v63 = vpop.f32.mrf.mxu1  ;;  %v2526_v51 = vmul.f32 0.5, %v2512_v21 }
0x13bd   : > { %v2548_v33 = vadd.f32 %v2542_v26, %v2508_v16  ;;  %v2543_v57 = vmul.f32 %v2537_v30, %v2510_v19  ;;  %v2538_v10 = vmul.f32 %v2532_v31, %v2512_v21  ;;  %v2533_v56 = vmul.f32 0.044715, %v2514_v32  ;;  %v2993_v31 = vld [vmem:[%s4675_s14] ss:$0 sm:$0xff] }
0x13be   : > { %v2518_v60 = vadd.f32 %v2517_v63, %v2420_v13  ;;  %v2519_v28 = vpop.f32.mrf.mxu1  ;;  %v2527_v52 = vmul.f32 0.5, %v2514_v32 }
0x13bf   : > { %v2554_v0 = vmul.f32 0.7978846, %v2548_v33  ;;  %v2544_v4 = vmul.f32 %v2538_v10, %v2512_v21  ;;  %v2539_v6 = vmul.f32 %v2533_v56, %v2514_v32  ;;  %v2520_v7 = vadd.f32 %v2519_v28, %v2424_v12  ;;  %v3010_v33 = vld [vmem:[%s4727_s3] ss:$0 sm:$0xff] }
0x13c0   : > { %v2534_v8 = vmul.f32 0.044715, %v2518_v60  ;;  %v2521_v11 = vpop.f32.mrf.mxu1  ;;  %v2549_v14 = vadd.f32 %v2543_v57, %v2510_v19 }
0x13c1   : > { %v2550_v15 = vadd.f32 %v2544_v4, %v2512_v21  ;;  %v2545_v23 = vmul.f32 %v2539_v6, %v2514_v32  ;;  %v2535_v24 = vmul.f32 0.044715, %v2520_v7  ;;  %3565 = vtanh.f32 %v2554_v0 }
0x13c2   : > { %v2540_v27 = vmul.f32 %v2534_v8, %v2518_v60  ;;  %v2522_v29 = vpop.f32.mrf.mxu1  ;;  %v2555_v39 = vmul.f32 0.7978846, %v2549_v14  ;;  %v2529_v18 = vmul.f32 0.5, %v2520_v7  ;;  %v2528_v21 = vmul.f32 0.5, %v2518_v60 }
0x13c3   : > { %v2556_v40 = vmul.f32 0.7978846, %v2550_v15  ;;  %v2541_v43 = vmul.f32 %v2535_v24, %v2520_v7  ;;  %v2551_v45 = vadd.f32 %v2545_v23, %v2514_v32 }
0x13c4   : > { %3567 = vtanh.f32 %v2555_v39  ;;  %v2546_v59 = vmul.f32 %v2540_v27, %v2518_v60 }
0x13c5   : > { %3569 = vtanh.f32 %v2556_v40  ;;  %v2557_v61 = vmul.f32 0.7978846, %v2551_v45  ;;  %v2547_v2 = vmul.f32 %v2541_v43, %v2520_v7 }
0x13c6   : > { %v2552_v5 = vadd.f32 %v2546_v59, %v2518_v60 }
0x13c7   : > { %3571 = vtanh.f32 %v2557_v61  ;;  %v2553_v34 = vadd.f32 %v2547_v2, %v2520_v7 }
0x13c8   : > { %v2558_v35 = vmul.f32 0.7978846, %v2552_v5 }
0x13c9   : > { %v2559_v36 = vmul.f32 0.7978846, %v2553_v34 }
0x13ca   : > { %3573 = vtanh.f32 %v2558_v35 }
0x13cb   : > { %3575 = vtanh.f32 %v2559_v36 }
0x13ce   : > { %v3566_v38 = vpop.eup %3565 }
0x13cf   : > { %v2566_v42 = vadd.f32 1.0, %v3566_v38 }
0x13d1   : > { %v3568_v25 = vpop.eup %3567  ;;  %v2572_v17 = vmul.f32 %v2566_v42, %v2524_v54 }
0x13d2   : > { %v3570_v41 = vpop.eup %3569  ;;  %v2567_v47 = vadd.f32 1.0, %v3568_v25 }
0x13d3   : > { %v2568_v48 = vadd.f32 1.0, %v3570_v41 }
0x13d4   : > { %v3572_v49 = vpop.eup %3571  ;;  %v2573_v62 = vmul.f32 %v2567_v47, %v2525_v44 }
0x13d5   : > { %v2569_v53 = vadd.f32 1.0, %v3572_v49  ;;  %v2574_v55 = vmul.f32 %v2568_v48, %v2526_v51 }
0x13d7   : > { %v3574_v58 = vpop.eup %3573  ;;  %v2575_v13 = vmul.f32 %v2569_v53, %v2527_v52  ;;  %v2578_v20 = vpack.c.bf16 %v2574_v55, %v2572_v17 }
0x13d8   : > { %v3576_v12 = vpop.eup %3575  ;;  %v2570_v1 = vadd.f32 1.0, %v3574_v58 }
0x13d9   : > { %v2579_v9 = vpack.c.bf16 %v2575_v13, %v2573_v62  ;;  %v2571_v3 = vadd.f32 1.0, %v3576_v12 }
0x13da   : > { %v2576_v19 = vmul.f32 %v2570_v1, %v2528_v21 }
0x13db   : > { %2749 = vmatprep.mubr.bf16.mxu0 %v2579_v9  ;;  %v2577_v22 = vmul.f32 %v2571_v3, %v2529_v18 }
0x13dc   : > { %2750 = vmatmul.mubr.bf16.vlgmr.msra.gmra.mxu0 %v2578_v20  ;;  %v2580_v30 = vpack.c.bf16 %v2576_v19, %v2576_v19 }
0x13dd   : > { %v2581_v26 = vpack.c.bf16 %v2577_v22, %v2577_v22 }
0x13df   : > { %2757 = vmatprep.mubr.bf16.mxu0 %v2581_v26 }
0x13e4   : > { %2758 = vmatmul.mubr.bf16.gmra.mxu0 %v2580_v30 }
0x149c   : > { %v3100_v16 = vpop.f32.mrf.mxu0 }
0x149e   : > { %v3101_v32 = vpop.f32.mrf.mxu0 }
0x149f   : > { %v3102_v63 = vadd.f32 %v3101_v32, %v3100_v16 }
0x14a0   : > { %v3103_v57 = vpop.f32.mrf.mxu0 }
0x14a1   : > { %v2752_v10 = vadd.f32 %v3102_v63, %v2993_v31 }
0x14a2   : > { %v3104_v56 = vpop.f32.mrf.mxu0 }
0x14a3   : > { %v2772_v60 = vmul.f32 %v3010_v33, %v2752_v10  ;;  %v3105_v28 = vadd.f32 %v3104_v56, %v3103_v57 }
0x14a4   : > { %v3106_v0 = vpop.f32.mrf.mxu0 }
0x14a5   : > { %v2775_v4 = vadd.f32 %v2772_v60, %v4513_v37  ;;  %v2755_v6 = vadd.f32 %v3105_v28, %v2993_v31 }
0x14a6   : > { %v3107_v7 = vpop.f32.mrf.mxu0 }
0x14a7   : > { %2778 = vst.msk [vmem:[%s583_s24] sm:$0xff] %vm588_vm0, %v2775_v4  ;;  %v2773_v8 = vmul.f32 %v3010_v33, %v2755_v6  ;;  %v3108_v11 = vadd.f32 %v3107_v7, %v3106_v0 }
0x14a8   : > { %v3109_v14 = vpop.f32.mrf.mxu0 }
0x14a9   : > { %v2776_v15 = vadd.f32 %v2773_v8, %v4521_v50  ;;  %v2760_v23 = vadd.f32 %v3108_v11, %v2993_v31 }
0x14aa   : > { %v3110_v24 = vpop.f32.mrf.mxu0 }
0x14ab   : > { %2779 = vst.msk [vmem:[%s583_s24 + $0x8] sm:$0xff] %vm588_vm0, %v2776_v15  ;;  %v2774_v37 = vmul.f32 %v3010_v33, %v2760_v23 }
0x14ad   : > { %v2777_v27 = vadd.f32 %v2774_v37, %v4516_v46 }
0x14af   : > { %2780 = vst.msk [vmem:[%s583_s24 + $0x10] sm:$0xff] %vm588_vm0, %v2777_v27 }
0x14b0   : > { %3699 = shalt.err (!%p3696_p9)
}
0x14b1   : > { %s3700_s30 = scalar_lea.hbm %s4613_s28, 384  ;;  %s3704_s24 = scalar_lea.hbm %s4729_s29, 768 }
0x14b2   : > { %p3701_p1 = scmp.ne.s32.totalorder %s4613_s28, %s3700_s30  ;;  %p3705_p8 = scmp.lt.s32.totalorder %s4613_s28, %s4729_s29 }
0x14b3   : > { %p3706_p3 = scmp.lt.s32.totalorder %s3704_s24, %s3700_s30 }
0x14b4   : > { %p3702_p4 = pnand %p3701_p1, %p4730_p12 }
0x14b5   : > { %p3707_p7 = por %p3706_p3, %p3705_p8 }
0x14b6   : > { %p3703_p6 = pneg %p3702_p4 }
0x14b8   : > { %p3708_p11 = pnand %p3707_p7, %p3703_p6 }
0x14ba   : > { %3711 = shalt.err (!%p3708_p11)
}
0x14bb   : > { %s3785_s27 = smov 128  }
0x14bc   : > { %3294 = dma.vmem_to_hbm [thread:$0]  (%p4730_p12), %s4616_s17, 384, %s4613_s28, %s2782_s25, %s3785_s27, %s3785_s27, %s3782_s19  }
0x14bd PF: > { %s4731_s15 = sld [smem:[#allocation15_spill]] }
0x14be   : > { %s4732_s16 = sld [smem:[#allocation18_spill]] }
0x14bf   : > { %s4733_s20 = sld [smem:[#allocation17_spill]] }
0x14c3   : > { %s2810_s0 = sand.u32 1, %s4731_s15  }
0x14c4   : > { %p4734_p13 = scmp.ne.s32.totalorder %s4732_s16, 0  ;;  %s2811_s30 = scalar_lea.sflag [#allocation4], %s2810_s0 }
0x14c5   : > { %p4735_p0 = scmp.ge.s32.totalorder %s4733_s20, 2 }
0x14c7   : > { %p3311_p5 = pnand %p4735_p0, %p4734_p13 }
0x14c9   : > { %p3312_p10 = pneg %p3311_p5 }
0x14cb   : > { %3741 = dma.done.wait (%p3312_p10), %s2811_s30, 384  }
0x14cc   : > { %3743 = vsyncadd (%p3312_p10), %s2811_s30, 4294966912  ;;  %s4736_s24 = sld [smem:[#allocation19_spill]]  ;;  %s4739_s21 = smov %s3750_s22 }
0x14cd   : > { %s4737_s23 = sld [smem:[#allocation16_spill]] }
0x14ce   : > { %s4738_s3 = sld [smem:[#allocation20_spill]] }
0x14d2   : > { %p31_p2 = scmp.ge.s32.totalorder %s4736_s24, 4  }
0x14d3   : > { %s4740_s22 = smov %s4737_s23 }
0x14d4   : > { %s4741_s23 = smov %s4738_s3  ;;  %33 = sbr.rel (!%p31_p2) target bundleno = 14 (0xe), region = 148 }
0x14d9   :  { %2816 = vsyncpa [#allocation3], 1 }
0x14da   :  { %2818 = vsyncpa [#allocation3 + $0x1], 1 }
0x14db   :  { %2819 = vsyncpa [#allocation6], 1 }
0x14dc   :  { %2820 = vsyncpa [#allocation9], 1 }
0x14dd   :  { %2821 = vsyncpa [#allocation4], 1 }
0x14de   :  { %2823 = vsyncpa [#allocation4 + $0x1], 1 }

</bundles_post_ra>
